<compile_context>
chip_gen: v5e
topology: v5e:2x2
jax: 0.10.0
libtpu: 0.0.40
codegen_flags: <defaults>
</compile_context>

<pallas_src>
import math
import functools
import jax
import jax.numpy as jnp
from jax.experimental import pallas as pl
from jax.experimental.pallas import tpu as pltpu

# ---- small config (scaled-down GPT-2) ----
D_MODEL = 32
N_HEADS = 4
D_HEAD = 8
D_MLP = 128
N_LAYERS = 2
D_VOCAB = 128
N_CTX = 16
LN_EPS = 1e-5
INIT_RANGE = 0.02

_HD = N_HEADS * D_HEAD  # 32


# ---------------- in-kernel helpers ----------------
def _layernorm(x, w, b):
    # x: (R, D) f32; w, b: (1, D) f32
    mu = jnp.mean(x, axis=-1, keepdims=True)
    xc = x - mu
    scale = jnp.sqrt(jnp.mean(xc * xc, axis=-1, keepdims=True) + LN_EPS)
    return xc / scale * w + b


def _gelu_new(x):
    # GPT-2 "new" gelu (f32, EUP tanh)
    return 0.5 * x * (1.0 + jnp.tanh(
        math.sqrt(2.0 / math.pi) * (x + 0.044715 * x * x * x)))


# ---------------- single fused forward kernel ----------------
def _make_fused_kernel(B, S):
    BS = B * S

    def kernel(tok_ref, we_ref, wpos_ref,
               ln1w_ref, ln1b_ref, wqkv_ref, bqkv_ref, wo_ref, bo_ref,
               ln2w_ref, ln2b_ref, win_ref, bin_ref, wout_ref, bout_ref,
               lnfw_ref, lnfb_ref, wu_ref, bu_ref,
               out_ref):
        # --- embedding: one-hot (BS,V) @ W_E (V,D) on the MXU ---
        vocab_ids = jax.lax.broadcasted_iota(jnp.int32, (BS, D_VOCAB), 1)
        onehot = (vocab_ids == tok_ref[...]).astype(jnp.bfloat16)
        residual = jnp.dot(onehot, we_ref[...],
                           preferred_element_type=jnp.float32)      # (BS, D) f32

        # --- positional embedding (rows ordered (b, s)) ---
        pos = wpos_ref[...][:S, :]                                   # (S, D)
        pos_rep = jnp.concatenate([pos] * B, axis=0)                 # (BS, D)
        residual = residual + pos_rep

        # --- causal mask bias, built once, reused by every layer ---
        row = jax.lax.broadcasted_iota(jnp.int32, (S, S), 0)
        col = jax.lax.broadcasted_iota(jnp.int32, (S, S), 1)
        mask_bias = jnp.where(col > row, jnp.float32(-1e30),
                              jnp.float32(0.0))                      # (S, S)

        # --- transformer blocks (static unrolled layer loop) ---
        for l in range(N_LAYERS):
            # ln1 + fused QKV projection (one matmul for all heads, Q pre-scaled)
            n1 = _layernorm(residual, ln1w_ref[l], ln1b_ref[l])
            qkv = jnp.dot(n1.astype(jnp.bfloat16), wqkv_ref[l],
                          preferred_element_type=jnp.float32) + bqkv_ref[l]

            # per-head attention (static head loop; 3-D batched einsums)
            z_parts = []
            for h in range(N_HEADS):
                o = h * D_HEAD
                qh = qkv[:, o:o + D_HEAD].reshape(B, S, D_HEAD)
                kh = qkv[:, _HD + o:_HD + o + D_HEAD].reshape(B, S, D_HEAD)
                vh = qkv[:, 2 * _HD + o:2 * _HD + o + D_HEAD].reshape(B, S, D_HEAD)

                s_h = jnp.einsum('bqd,bkd->bqk', qh, kh,
                                 preferred_element_type=jnp.float32)
                s_h = s_h + mask_bias[None, :, :]
                m = jnp.max(s_h, axis=-1, keepdims=True)
                p = jnp.exp(s_h - m)
                denom = jnp.sum(p, axis=-1, keepdims=True)
                pattern = p * pl.reciprocal(denom, approx=True)
                z_h = jnp.einsum('bqk,bkd->bqd', pattern, vh,
                                 preferred_element_type=jnp.float32)
                z_parts.append(z_h.reshape(BS, D_HEAD))

            # fused output projection (one matmul for all heads)
            z_cat = jnp.concatenate(z_parts, axis=1)                 # (BS, H*Dh)
            attn_out = jnp.dot(z_cat.astype(jnp.bfloat16), wo_ref[l],
                               preferred_element_type=jnp.float32) + bo_ref[l]
            residual = residual + attn_out

            # ln2 + MLP
            n2 = _layernorm(residual, ln2w_ref[l], ln2b_ref[l])
            pre = jnp.dot(n2.astype(jnp.bfloat16), win_ref[l],
                          preferred_element_type=jnp.float32) + bin_ref[l]
            post = _gelu_new(pre)
            mlp_out = jnp.dot(post.astype(jnp.bfloat16), wout_ref[l],
                              preferred_element_type=jnp.float32) + bout_ref[l]
            residual = residual + mlp_out

        # --- final layernorm + unembed (lane-dense (BS, 128) output) ---
        nf = _layernorm(residual, lnfw_ref[...], lnfb_ref[...])
        logits = jnp.dot(nf.astype(jnp.bfloat16), wu_ref[...],
                         preferred_element_type=jnp.float32) + bu_ref[...]
        out_ref[...] = logits

    return kernel


_VMEM = pl.BlockSpec(memory_space=pltpu.MemorySpace.VMEM)
_N_INPUTS = 19


@functools.lru_cache(maxsize=None)
def _build_forward(B, S):
    return pl.pallas_call(
        _make_fused_kernel(B, S),
        out_shape=jax.ShapeDtypeStruct((B * S, D_VOCAB), jnp.float32),
        in_specs=[_VMEM] * _N_INPUTS,
        out_specs=_VMEM,
    )


# ---------------- parameter packing (done ONCE, outside the forward) ----------------
def pack_params(p):
    """Stack per-layer weights, fuse QKV / W_O across heads, fold 1/sqrt(d_head)
    into W_Q/b_Q, cast matmul weights to bf16.  Weight masks default to off
    (identity); if enabled they would be multiplied into the weights here."""
    scale = 1.0 / math.sqrt(D_HEAD)

    def stack(key):
        return jnp.stack([blk[key] for blk in p['blocks']])

    wqkv_l, bqkv_l, wo_l = [], [], []
    for blk in p['blocks']:
        wq = jnp.transpose(blk['W_Q'], (1, 0, 2)).reshape(D_MODEL, _HD) * scale
        wk = jnp.transpose(blk['W_K'], (1, 0, 2)).reshape(D_MODEL, _HD)
        wv = jnp.transpose(blk['W_V'], (1, 0, 2)).reshape(D_MODEL, _HD)
        wqkv_l.append(jnp.concatenate([wq, wk, wv], axis=1))        # (D, 3*H*Dh)
        bq = blk['b_Q'].reshape(1, _HD) * scale
        bk = blk['b_K'].reshape(1, _HD)
        bv = blk['b_V'].reshape(1, _HD)
        bqkv_l.append(jnp.concatenate([bq, bk, bv], axis=1))        # (1, 3*H*Dh)
        wo_l.append(blk['W_O'].reshape(_HD, D_MODEL))               # (H*Dh, D)

    return {
        'W_E': p['W_E'].astype(jnp.bfloat16),
        'W_pos': p['W_pos'],
        'ln1_w': stack('ln1_w'), 'ln1_b': stack('ln1_b'),
        'W_qkv': jnp.stack(wqkv_l).astype(jnp.bfloat16),
        'b_qkv': jnp.stack(bqkv_l),
        'W_O': jnp.stack(wo_l).astype(jnp.bfloat16),
        'b_O': stack('b_O'),
        'ln2_w': stack('ln2_w'), 'ln2_b': stack('ln2_b'),
        'W_in': stack('W_in').astype(jnp.bfloat16), 'b_in': stack('b_in'),
        'W_out': stack('W_out').astype(jnp.bfloat16), 'b_out': stack('b_out'),
        'lnf_w': p['final']['lnf_w'], 'lnf_b': p['final']['lnf_b'],
        'W_U': p['final']['W_U'].astype(jnp.bfloat16),
        'b_U': p['final']['b_U'],
    }


def demo_transformer_forward(tokens, packed):
    B, S = tokens.shape
    fwd = _build_forward(B, S)
    tok2d = tokens.reshape(B * S, 1).astype(jnp.int32)
    logits_flat = fwd(
        tok2d, packed['W_E'], packed['W_pos'],
        packed['ln1_w'], packed['ln1_b'],
        packed['W_qkv'], packed['b_qkv'], packed['W_O'], packed['b_O'],
        packed['ln2_w'], packed['ln2_b'],
        packed['W_in'], packed['b_in'], packed['W_out'], packed['b_out'],
        packed['lnf_w'], packed['lnf_b'], packed['W_U'], packed['b_U'])
    return [logits_flat.reshape(B, S, D_VOCAB)]


# ---------------- deterministic parameter init ----------------
def init_params(key):
    std = INIT_RANGE
    ks = iter(jax.random.split(key, 8 + 12 * N_LAYERS))

    def nrm(shape):
        return std * jax.random.normal(next(ks), shape, jnp.float32)

    params = {
        'W_E': nrm((D_VOCAB, D_MODEL)),
        'W_pos': nrm((N_CTX, D_MODEL)),
        'blocks': [],
        'final': {
            'lnf_w': jnp.ones((1, D_MODEL), jnp.float32),
            'lnf_b': jnp.zeros((1, D_MODEL), jnp.float32),
            'W_U': nrm((D_MODEL, D_VOCAB)),
            'b_U': jnp.zeros((1, D_VOCAB), jnp.float32),
        },
    }
    for _ in range(N_LAYERS):
        params['blocks'].append({
            'ln1_w': jnp.ones((1, D_MODEL), jnp.float32),
            'ln1_b': jnp.zeros((1, D_MODEL), jnp.float32),
            'W_Q': nrm((N_HEADS, D_MODEL, D_HEAD)),
            'b_Q': jnp.zeros((N_HEADS, D_HEAD), jnp.float32),
            'W_K': nrm((N_HEADS, D_MODEL, D_HEAD)),
            'b_K': jnp.zeros((N_HEADS, D_HEAD), jnp.float32),
            'W_V': nrm((N_HEADS, D_MODEL, D_HEAD)),
            'b_V': jnp.zeros((N_HEADS, D_HEAD), jnp.float32),
            'W_O': nrm((N_HEADS, D_HEAD, D_MODEL)),
            'b_O': jnp.zeros((1, D_MODEL), jnp.float32),
            'ln2_w': jnp.ones((1, D_MODEL), jnp.float32),
            'ln2_b': jnp.zeros((1, D_MODEL), jnp.float32),
            'W_in': nrm((D_MODEL, D_MLP)),
            'b_in': jnp.zeros((1, D_MLP), jnp.float32),
            'W_out': nrm((D_MLP, D_MODEL)),
            'b_out': jnp.zeros((1, D_MODEL), jnp.float32),
        })
    return params


if __name__ == "__main__":
    key = jax.random.PRNGKey(0)
    pkey, tkey = jax.random.split(key)
    params = init_params(pkey)
    packed = pack_params(params)   # one-time weight fusion / stacking / bf16 cast

    B, S = 2, 8
    tokens = jax.random.randint(tkey, (B, S), 0, D_VOCAB, dtype=jnp.int32)

    (logits,) = demo_transformer_forward(tokens, packed)
    logits = jax.block_until_ready(logits)
    assert logits.shape == (B, S, D_VOCAB)
    assert bool(jnp.all(jnp.isfinite(logits)))
    print("KERNEL_OK")
</pallas_src>

<mosaic_0001>
module attributes {stable_mosaic.version = 11 : i64} {
  func.func @kernel(%arg0: memref<16x1xi32, #tpu.memory_space<vmem>>, %arg1: memref<128x32xbf16, #tpu.memory_space<vmem>>, %arg2: memref<16x32xf32, #tpu.memory_space<vmem>>, %arg3: memref<2x1x32xf32, #tpu.memory_space<vmem>>, %arg4: memref<2x1x32xf32, #tpu.memory_space<vmem>>, %arg5: memref<2x32x96xbf16, #tpu.memory_space<vmem>>, %arg6: memref<2x1x96xf32, #tpu.memory_space<vmem>>, %arg7: memref<2x32x32xbf16, #tpu.memory_space<vmem>>, %arg8: memref<2x1x32xf32, #tpu.memory_space<vmem>>, %arg9: memref<2x1x32xf32, #tpu.memory_space<vmem>>, %arg10: memref<2x1x32xf32, #tpu.memory_space<vmem>>, %arg11: memref<2x32x128xbf16, #tpu.memory_space<vmem>>, %arg12: memref<2x1x128xf32, #tpu.memory_space<vmem>>, %arg13: memref<2x128x32xbf16, #tpu.memory_space<vmem>>, %arg14: memref<2x1x32xf32, #tpu.memory_space<vmem>>, %arg15: memref<1x32xf32, #tpu.memory_space<vmem>>, %arg16: memref<1x32xf32, #tpu.memory_space<vmem>>, %arg17: memref<32x128xbf16, #tpu.memory_space<vmem>>, %arg18: memref<1x128xf32, #tpu.memory_space<vmem>>, %arg19: memref<16x128xf32, #tpu.memory_space<vmem>>) attributes {dimension_semantics = [], scalar_prefetch = 0 : i64, scratch_operands = 0 : i64, tpu.core_type = #tpu.core_type<tc>} {
    %0 = tpu.iota {dimensions = array<i32: 1>} : vector<16x128xi32>
    %c0 = arith.constant 0 : index
    %c0_0 = arith.constant 0 : index
    %1 = vector.load %arg0[%c0, %c0_0] : memref<16x1xi32, #tpu.memory_space<vmem>>, vector<16x1xi32>
    %2 = vector.broadcast %1 : vector<16x1xi32> to vector<16x128xi32>
    %3 = arith.cmpi eq, %0, %2 : vector<16x128xi32>
    %4 = arith.extui %3 : vector<16x128xi1> to vector<16x128xi32>
    %5 = arith.sitofp %4 : vector<16x128xi32> to vector<16x128xf32>
    %6 = arith.truncf %5 : vector<16x128xf32> to vector<16x128xbf16>
    %c0_1 = arith.constant 0 : index
    %c0_2 = arith.constant 0 : index
    %7 = vector.load %arg1[%c0_1, %c0_2] : memref<128x32xbf16, #tpu.memory_space<vmem>>, vector<128x32xbf16>
    %cst = arith.constant dense<0.000000e+00> : vector<16x32xf32>
    %8 = tpu.matmul %6, %7, %cst {dimension_numbers = #tpu.dot_dimension_numbers<[1], [0], [0], [1], [0, 0, 1, 1], [], []>} : vector<16x128xbf16>, vector<128x32xbf16>, vector<16x32xf32> -> vector<16x32xf32>
    %c0_3 = arith.constant 0 : index
    %c0_4 = arith.constant 0 : index
    %9 = vector.load %arg2[%c0_3, %c0_4] : memref<16x32xf32, #tpu.memory_space<vmem>>, vector<16x32xf32>
    %10 = vector.extract_strided_slice %9 {offsets = [0, 0], sizes = [8, 32], strides = [1, 1]} : vector<16x32xf32> to vector<8x32xf32>
    %11 = tpu.concatenate %10, %10 in 0 : vector<8x32xf32>, vector<8x32xf32> -> vector<16x32xf32>
    %12 = arith.addf %8, %11 : vector<16x32xf32>
    %13 = tpu.iota {dimensions = array<i32: 0>} : vector<8x8xi32>
    %14 = tpu.iota {dimensions = array<i32: 1>} : vector<8x8xi32>
    %15 = arith.cmpi sgt, %14, %13 : vector<8x8xi32>
    %cst_5 = arith.constant -1.000000e+30 : f32
    %cst_6 = arith.constant 0.000000e+00 : f32
    %16 = vector.broadcast %cst_5 : f32 to vector<8x8xf32>
    %17 = vector.broadcast %cst_6 : f32 to vector<8x8xf32>
    %18 = arith.select %15, %16, %17 : vector<8x8xi1>, vector<8x8xf32>
    %c0_7 = arith.constant 0 : index
    %c0_8 = arith.constant 0 : index
    %c0_9 = arith.constant 0 : index
    %19 = vector.load %arg3[%c0_7, %c0_8, %c0_9] : memref<2x1x32xf32, #tpu.memory_space<vmem>>, vector<1x1x32xf32>
    %20 = vector.shape_cast %19 : vector<1x1x32xf32> to vector<1x32xf32>
    %c0_10 = arith.constant 0 : index
    %c0_11 = arith.constant 0 : index
    %c0_12 = arith.constant 0 : index
    %21 = vector.load %arg4[%c0_10, %c0_11, %c0_12] : memref<2x1x32xf32, #tpu.memory_space<vmem>>, vector<1x1x32xf32>
    %22 = vector.shape_cast %21 : vector<1x1x32xf32> to vector<1x32xf32>
    %cst_13 = arith.constant dense<0.000000e+00> : vector<16xf32>
    %23 = vector.multi_reduction <add>, %12, %cst_13 [1] : vector<16x32xf32> to vector<16xf32>
    %24 = vector.shape_cast %23 : vector<16xf32> to vector<16x1xf32>
    %cst_14 = arith.constant 3.200000e+01 : f32
    %25 = vector.broadcast %cst_14 : f32 to vector<16x1xf32>
    %26 = arith.divf %24, %25 : vector<16x1xf32>
    %27 = vector.broadcast %26 : vector<16x1xf32> to vector<16x32xf32>
    %28 = arith.subf %12, %27 : vector<16x32xf32>
    %29 = arith.mulf %28, %28 : vector<16x32xf32>
    %cst_15 = arith.constant dense<0.000000e+00> : vector<16xf32>
    %30 = vector.multi_reduction <add>, %29, %cst_15 [1] : vector<16x32xf32> to vector<16xf32>
    %31 = vector.shape_cast %30 : vector<16xf32> to vector<16x1xf32>
    %cst_16 = arith.constant 3.200000e+01 : f32
    %32 = vector.broadcast %cst_16 : f32 to vector<16x1xf32>
    %33 = arith.divf %31, %32 : vector<16x1xf32>
    %cst_17 = arith.constant 9.99999974E-6 : f32
    %34 = vector.broadcast %cst_17 : f32 to vector<16x1xf32>
    %35 = arith.addf %33, %34 : vector<16x1xf32>
    %36 = math.sqrt %35 : vector<16x1xf32>
    %37 = vector.broadcast %36 : vector<16x1xf32> to vector<16x32xf32>
    %38 = arith.divf %28, %37 : vector<16x32xf32>
    %39 = vector.broadcast %20 : vector<1x32xf32> to vector<16x32xf32>
    %40 = arith.mulf %38, %39 : vector<16x32xf32>
    %41 = vector.broadcast %22 : vector<1x32xf32> to vector<16x32xf32>
    %42 = arith.addf %40, %41 : vector<16x32xf32>
    %43 = arith.truncf %42 : vector<16x32xf32> to vector<16x32xbf16>
    %c0_18 = arith.constant 0 : index
    %c0_19 = arith.constant 0 : index
    %c0_20 = arith.constant 0 : index
    %44 = vector.load %arg5[%c0_18, %c0_19, %c0_20] : memref<2x32x96xbf16, #tpu.memory_space<vmem>>, vector<1x32x96xbf16>
    %45 = vector.shape_cast %44 : vector<1x32x96xbf16> to vector<32x96xbf16>
    %cst_21 = arith.constant dense<0.000000e+00> : vector<16x96xf32>
    %46 = tpu.matmul %43, %45, %cst_21 {dimension_numbers = #tpu.dot_dimension_numbers<[1], [0], [0], [1], [0, 0, 1, 1], [], []>} : vector<16x32xbf16>, vector<32x96xbf16>, vector<16x96xf32> -> vector<16x96xf32>
    %c0_22 = arith.constant 0 : index
    %c0_23 = arith.constant 0 : index
    %c0_24 = arith.constant 0 : index
    %47 = vector.load %arg6[%c0_22, %c0_23, %c0_24] : memref<2x1x96xf32, #tpu.memory_space<vmem>>, vector<1x1x96xf32>
    %48 = vector.shape_cast %47 : vector<1x1x96xf32> to vector<1x96xf32>
    %49 = vector.broadcast %48 : vector<1x96xf32> to vector<16x96xf32>
    %50 = arith.addf %46, %49 : vector<16x96xf32>
    %51 = vector.extract_strided_slice %50 {offsets = [0, 0], sizes = [16, 8], strides = [1, 1]} : vector<16x96xf32> to vector<16x8xf32>
    %52 = vector.shape_cast %51 : vector<16x8xf32> to vector<2x8x8xf32>
    %53 = vector.extract_strided_slice %50 {offsets = [0, 32], sizes = [16, 8], strides = [1, 1]} : vector<16x96xf32> to vector<16x8xf32>
    %54 = vector.shape_cast %53 : vector<16x8xf32> to vector<2x8x8xf32>
    %55 = vector.extract_strided_slice %50 {offsets = [0, 64], sizes = [16, 8], strides = [1, 1]} : vector<16x96xf32> to vector<16x8xf32>
    %56 = vector.shape_cast %55 : vector<16x8xf32> to vector<2x8x8xf32>
    "tpu.trace_start"() <{level = 10 : i32, message = "bqd,bkd->bqk"}> : () -> ()
    %cst_25 = arith.constant dense<0.000000e+00> : vector<2x8x8xf32>
    %57 = tpu.matmul %52, %54, %cst_25 {dimension_numbers = #tpu.dot_dimension_numbers<[2], [2], [1], [1], [0, 0, 0, 1, 1, 1], [0], [0]>} : vector<2x8x8xf32>, vector<2x8x8xf32>, vector<2x8x8xf32> -> vector<2x8x8xf32>
    "tpu.trace_stop"() : () -> ()
    %58 = vector.shape_cast %18 : vector<8x8xf32> to vector<1x8x8xf32>
    %59 = vector.broadcast %58 : vector<1x8x8xf32> to vector<2x8x8xf32>
    %60 = arith.addf %57, %59 : vector<2x8x8xf32>
    %cst_26 = arith.constant dense<0xFF800000> : vector<2x8xf32>
    %61 = vector.multi_reduction <maximumf>, %60, %cst_26 [2] : vector<2x8x8xf32> to vector<2x8xf32>
    %62 = vector.shape_cast %61 : vector<2x8xf32> to vector<2x8x1xf32>
    %63 = vector.broadcast %62 : vector<2x8x1xf32> to vector<2x8x8xf32>
    %64 = arith.subf %60, %63 : vector<2x8x8xf32>
    %65 = math.exp %64 : vector<2x8x8xf32>
    %cst_27 = arith.constant dense<0.000000e+00> : vector<2x8xf32>
    %66 = vector.multi_reduction <add>, %65, %cst_27 [2] : vector<2x8x8xf32> to vector<2x8xf32>
    %67 = vector.shape_cast %66 : vector<2x8xf32> to vector<2x8x1xf32>
    %68 = tpu.reciprocal %67 {approx = true} : vector<2x8x1xf32> -> vector<2x8x1xf32>
    %69 = vector.broadcast %68 : vector<2x8x1xf32> to vector<2x8x8xf32>
    %70 = arith.mulf %65, %69 : vector<2x8x8xf32>
    "tpu.trace_start"() <{level = 10 : i32, message = "bqk,bkd->bqd"}> : () -> ()
    %cst_28 = arith.constant dense<0.000000e+00> : vector<2x8x8xf32>
    %71 = tpu.matmul %70, %56, %cst_28 {dimension_numbers = #tpu.dot_dimension_numbers<[2], [1], [1], [2], [0, 0, 0, 1, 1, 2], [0], [0]>} : vector<2x8x8xf32>, vector<2x8x8xf32>, vector<2x8x8xf32> -> vector<2x8x8xf32>
    "tpu.trace_stop"() : () -> ()
    %72 = vector.shape_cast %71 : vector<2x8x8xf32> to vector<16x8xf32>
    %73 = vector.extract_strided_slice %50 {offsets = [0, 8], sizes = [16, 8], strides = [1, 1]} : vector<16x96xf32> to vector<16x8xf32>
    %74 = vector.shape_cast %73 : vector<16x8xf32> to vector<2x8x8xf32>
    %75 = vector.extract_strided_slice %50 {offsets = [0, 40], sizes = [16, 8], strides = [1, 1]} : vector<16x96xf32> to vector<16x8xf32>
    %76 = vector.shape_cast %75 : vector<16x8xf32> to vector<2x8x8xf32>
    %77 = vector.extract_strided_slice %50 {offsets = [0, 72], sizes = [16, 8], strides = [1, 1]} : vector<16x96xf32> to vector<16x8xf32>
    %78 = vector.shape_cast %77 : vector<16x8xf32> to vector<2x8x8xf32>
    "tpu.trace_start"() <{level = 10 : i32, message = "bqd,bkd->bqk"}> : () -> ()
    %cst_29 = arith.constant dense<0.000000e+00> : vector<2x8x8xf32>
    %79 = tpu.matmul %74, %76, %cst_29 {dimension_numbers = #tpu.dot_dimension_numbers<[2], [2], [1], [1], [0, 0, 0, 1, 1, 1], [0], [0]>} : vector<2x8x8xf32>, vector<2x8x8xf32>, vector<2x8x8xf32> -> vector<2x8x8xf32>
    "tpu.trace_stop"() : () -> ()
    %80 = vector.shape_cast %18 : vector<8x8xf32> to vector<1x8x8xf32>
    %81 = vector.broadcast %80 : vector<1x8x8xf32> to vector<2x8x8xf32>
    %82 = arith.addf %79, %81 : vector<2x8x8xf32>
    %cst_30 = arith.constant dense<0xFF800000> : vector<2x8xf32>
    %83 = vector.multi_reduction <maximumf>, %82, %cst_30 [2] : vector<2x8x8xf32> to vector<2x8xf32>
    %84 = vector.shape_cast %83 : vector<2x8xf32> to vector<2x8x1xf32>
    %85 = vector.broadcast %84 : vector<2x8x1xf32> to vector<2x8x8xf32>
    %86 = arith.subf %82, %85 : vector<2x8x8xf32>
    %87 = math.exp %86 : vector<2x8x8xf32>
    %cst_31 = arith.constant dense<0.000000e+00> : vector<2x8xf32>
    %88 = vector.multi_reduction <add>, %87, %cst_31 [2] : vector<2x8x8xf32> to vector<2x8xf32>
    %89 = vector.shape_cast %88 : vector<2x8xf32> to vector<2x8x1xf32>
    %90 = tpu.reciprocal %89 {approx = true} : vector<2x8x1xf32> -> vector<2x8x1xf32>
    %91 = vector.broadcast %90 : vector<2x8x1xf32> to vector<2x8x8xf32>
    %92 = arith.mulf %87, %91 : vector<2x8x8xf32>
    "tpu.trace_start"() <{level = 10 : i32, message = "bqk,bkd->bqd"}> : () -> ()
    %cst_32 = arith.constant dense<0.000000e+00> : vector<2x8x8xf32>
    %93 = tpu.matmul %92, %78, %cst_32 {dimension_numbers = #tpu.dot_dimension_numbers<[2], [1], [1], [2], [0, 0, 0, 1, 1, 2], [0], [0]>} : vector<2x8x8xf32>, vector<2x8x8xf32>, vector<2x8x8xf32> -> vector<2x8x8xf32>
    "tpu.trace_stop"() : () -> ()
    %94 = vector.shape_cast %93 : vector<2x8x8xf32> to vector<16x8xf32>
    %95 = vector.extract_strided_slice %50 {offsets = [0, 16], sizes = [16, 8], strides = [1, 1]} : vector<16x96xf32> to vector<16x8xf32>
    %96 = vector.shape_cast %95 : vector<16x8xf32> to vector<2x8x8xf32>
    %97 = vector.extract_strided_slice %50 {offsets = [0, 48], sizes = [16, 8], strides = [1, 1]} : vector<16x96xf32> to vector<16x8xf32>
    %98 = vector.shape_cast %97 : vector<16x8xf32> to vector<2x8x8xf32>
    %99 = vector.extract_strided_slice %50 {offsets = [0, 80], sizes = [16, 8], strides = [1, 1]} : vector<16x96xf32> to vector<16x8xf32>
    %100 = vector.shape_cast %99 : vector<16x8xf32> to vector<2x8x8xf32>
    "tpu.trace_start"() <{level = 10 : i32, message = "bqd,bkd->bqk"}> : () -> ()
    %cst_33 = arith.constant dense<0.000000e+00> : vector<2x8x8xf32>
    %101 = tpu.matmul %96, %98, %cst_33 {dimension_numbers = #tpu.dot_dimension_numbers<[2], [2], [1], [1], [0, 0, 0, 1, 1, 1], [0], [0]>} : vector<2x8x8xf32>, vector<2x8x8xf32>, vector<2x8x8xf32> -> vector<2x8x8xf32>
    "tpu.trace_stop"() : () -> ()
    %102 = vector.shape_cast %18 : vector<8x8xf32> to vector<1x8x8xf32>
    %103 = vector.broadcast %102 : vector<1x8x8xf32> to vector<2x8x8xf32>
    %104 = arith.addf %101, %103 : vector<2x8x8xf32>
    %cst_34 = arith.constant dense<0xFF800000> : vector<2x8xf32>
    %105 = vector.multi_reduction <maximumf>, %104, %cst_34 [2] : vector<2x8x8xf32> to vector<2x8xf32>
    %106 = vector.shape_cast %105 : vector<2x8xf32> to vector<2x8x1xf32>
    %107 = vector.broadcast %106 : vector<2x8x1xf32> to vector<2x8x8xf32>
    %108 = arith.subf %104, %107 : vector<2x8x8xf32>
    %109 = math.exp %108 : vector<2x8x8xf32>
    %cst_35 = arith.constant dense<0.000000e+00> : vector<2x8xf32>
    %110 = vector.multi_reduction <add>, %109, %cst_35 [2] : vector<2x8x8xf32> to vector<2x8xf32>
    %111 = vector.shape_cast %110 : vector<2x8xf32> to vector<2x8x1xf32>
    %112 = tpu.reciprocal %111 {approx = true} : vector<2x8x1xf32> -> vector<2x8x1xf32>
    %113 = vector.broadcast %112 : vector<2x8x1xf32> to vector<2x8x8xf32>
    %114 = arith.mulf %109, %113 : vector<2x8x8xf32>
    "tpu.trace_start"() <{level = 10 : i32, message = "bqk,bkd->bqd"}> : () -> ()
    %cst_36 = arith.constant dense<0.000000e+00> : vector<2x8x8xf32>
    %115 = tpu.matmul %114, %100, %cst_36 {dimension_numbers = #tpu.dot_dimension_numbers<[2], [1], [1], [2], [0, 0, 0, 1, 1, 2], [0], [0]>} : vector<2x8x8xf32>, vector<2x8x8xf32>, vector<2x8x8xf32> -> vector<2x8x8xf32>
    "tpu.trace_stop"() : () -> ()
    %116 = vector.shape_cast %115 : vector<2x8x8xf32> to vector<16x8xf32>
    %117 = vector.extract_strided_slice %50 {offsets = [0, 24], sizes = [16, 8], strides = [1, 1]} : vector<16x96xf32> to vector<16x8xf32>
    %118 = vector.shape_cast %117 : vector<16x8xf32> to vector<2x8x8xf32>
    %119 = vector.extract_strided_slice %50 {offsets = [0, 56], sizes = [16, 8], strides = [1, 1]} : vector<16x96xf32> to vector<16x8xf32>
    %120 = vector.shape_cast %119 : vector<16x8xf32> to vector<2x8x8xf32>
    %121 = vector.extract_strided_slice %50 {offsets = [0, 88], sizes = [16, 8], strides = [1, 1]} : vector<16x96xf32> to vector<16x8xf32>
    %122 = vector.shape_cast %121 : vector<16x8xf32> to vector<2x8x8xf32>
    "tpu.trace_start"() <{level = 10 : i32, message = "bqd,bkd->bqk"}> : () -> ()
    %cst_37 = arith.constant dense<0.000000e+00> : vector<2x8x8xf32>
    %123 = tpu.matmul %118, %120, %cst_37 {dimension_numbers = #tpu.dot_dimension_numbers<[2], [2], [1], [1], [0, 0, 0, 1, 1, 1], [0], [0]>} : vector<2x8x8xf32>, vector<2x8x8xf32>, vector<2x8x8xf32> -> vector<2x8x8xf32>
    "tpu.trace_stop"() : () -> ()
    %124 = vector.shape_cast %18 : vector<8x8xf32> to vector<1x8x8xf32>
    %125 = vector.broadcast %124 : vector<1x8x8xf32> to vector<2x8x8xf32>
    %126 = arith.addf %123, %125 : vector<2x8x8xf32>
    %cst_38 = arith.constant dense<0xFF800000> : vector<2x8xf32>
    %127 = vector.multi_reduction <maximumf>, %126, %cst_38 [2] : vector<2x8x8xf32> to vector<2x8xf32>
    %128 = vector.shape_cast %127 : vector<2x8xf32> to vector<2x8x1xf32>
    %129 = vector.broadcast %128 : vector<2x8x1xf32> to vector<2x8x8xf32>
    %130 = arith.subf %126, %129 : vector<2x8x8xf32>
    %131 = math.exp %130 : vector<2x8x8xf32>
    %cst_39 = arith.constant dense<0.000000e+00> : vector<2x8xf32>
    %132 = vector.multi_reduction <add>, %131, %cst_39 [2] : vector<2x8x8xf32> to vector<2x8xf32>
    %133 = vector.shape_cast %132 : vector<2x8xf32> to vector<2x8x1xf32>
    %134 = tpu.reciprocal %133 {approx = true} : vector<2x8x1xf32> -> vector<2x8x1xf32>
    %135 = vector.broadcast %134 : vector<2x8x1xf32> to vector<2x8x8xf32>
    %136 = arith.mulf %131, %135 : vector<2x8x8xf32>
    "tpu.trace_start"() <{level = 10 : i32, message = "bqk,bkd->bqd"}> : () -> ()
    %cst_40 = arith.constant dense<0.000000e+00> : vector<2x8x8xf32>
    %137 = tpu.matmul %136, %122, %cst_40 {dimension_numbers = #tpu.dot_dimension_numbers<[2], [1], [1], [2], [0, 0, 0, 1, 1, 2], [0], [0]>} : vector<2x8x8xf32>, vector<2x8x8xf32>, vector<2x8x8xf32> -> vector<2x8x8xf32>
    "tpu.trace_stop"() : () -> ()
    %138 = vector.shape_cast %137 : vector<2x8x8xf32> to vector<16x8xf32>
    %139 = tpu.concatenate %72, %94, %116, %138 in 1 : vector<16x8xf32>, vector<16x8xf32>, vector<16x8xf32>, vector<16x8xf32> -> vector<16x32xf32>
    %140 = arith.truncf %139 : vector<16x32xf32> to vector<16x32xbf16>
    %c0_41 = arith.constant 0 : index
    %c0_42 = arith.constant 0 : index
    %c0_43 = arith.constant 0 : index
    %141 = vector.load %arg7[%c0_41, %c0_42, %c0_43] : memref<2x32x32xbf16, #tpu.memory_space<vmem>>, vector<1x32x32xbf16>
    %142 = vector.shape_cast %141 : vector<1x32x32xbf16> to vector<32x32xbf16>
    %cst_44 = arith.constant dense<0.000000e+00> : vector<16x32xf32>
    %143 = tpu.matmul %140, %142, %cst_44 {dimension_numbers = #tpu.dot_dimension_numbers<[1], [0], [0], [1], [0, 0, 1, 1], [], []>} : vector<16x32xbf16>, vector<32x32xbf16>, vector<16x32xf32> -> vector<16x32xf32>
    %c0_45 = arith.constant 0 : index
    %c0_46 = arith.constant 0 : index
    %c0_47 = arith.constant 0 : index
    %144 = vector.load %arg8[%c0_45, %c0_46, %c0_47] : memref<2x1x32xf32, #tpu.memory_space<vmem>>, vector<1x1x32xf32>
    %145 = vector.shape_cast %144 : vector<1x1x32xf32> to vector<1x32xf32>
    %146 = vector.broadcast %145 : vector<1x32xf32> to vector<16x32xf32>
    %147 = arith.addf %143, %146 : vector<16x32xf32>
    %148 = arith.addf %12, %147 : vector<16x32xf32>
    %c0_48 = arith.constant 0 : index
    %c0_49 = arith.constant 0 : index
    %c0_50 = arith.constant 0 : index
    %149 = vector.load %arg9[%c0_48, %c0_49, %c0_50] : memref<2x1x32xf32, #tpu.memory_space<vmem>>, vector<1x1x32xf32>
    %150 = vector.shape_cast %149 : vector<1x1x32xf32> to vector<1x32xf32>
    %c0_51 = arith.constant 0 : index
    %c0_52 = arith.constant 0 : index
    %c0_53 = arith.constant 0 : index
    %151 = vector.load %arg10[%c0_51, %c0_52, %c0_53] : memref<2x1x32xf32, #tpu.memory_space<vmem>>, vector<1x1x32xf32>
    %152 = vector.shape_cast %151 : vector<1x1x32xf32> to vector<1x32xf32>
    %cst_54 = arith.constant dense<0.000000e+00> : vector<16xf32>
    %153 = vector.multi_reduction <add>, %148, %cst_54 [1] : vector<16x32xf32> to vector<16xf32>
    %154 = vector.shape_cast %153 : vector<16xf32> to vector<16x1xf32>
    %cst_55 = arith.constant 3.200000e+01 : f32
    %155 = vector.broadcast %cst_55 : f32 to vector<16x1xf32>
    %156 = arith.divf %154, %155 : vector<16x1xf32>
    %157 = vector.broadcast %156 : vector<16x1xf32> to vector<16x32xf32>
    %158 = arith.subf %148, %157 : vector<16x32xf32>
    %159 = arith.mulf %158, %158 : vector<16x32xf32>
    %cst_56 = arith.constant dense<0.000000e+00> : vector<16xf32>
    %160 = vector.multi_reduction <add>, %159, %cst_56 [1] : vector<16x32xf32> to vector<16xf32>
    %161 = vector.shape_cast %160 : vector<16xf32> to vector<16x1xf32>
    %cst_57 = arith.constant 3.200000e+01 : f32
    %162 = vector.broadcast %cst_57 : f32 to vector<16x1xf32>
    %163 = arith.divf %161, %162 : vector<16x1xf32>
    %cst_58 = arith.constant 9.99999974E-6 : f32
    %164 = vector.broadcast %cst_58 : f32 to vector<16x1xf32>
    %165 = arith.addf %163, %164 : vector<16x1xf32>
    %166 = math.sqrt %165 : vector<16x1xf32>
    %167 = vector.broadcast %166 : vector<16x1xf32> to vector<16x32xf32>
    %168 = arith.divf %158, %167 : vector<16x32xf32>
    %169 = vector.broadcast %150 : vector<1x32xf32> to vector<16x32xf32>
    %170 = arith.mulf %168, %169 : vector<16x32xf32>
    %171 = vector.broadcast %152 : vector<1x32xf32> to vector<16x32xf32>
    %172 = arith.addf %170, %171 : vector<16x32xf32>
    %173 = arith.truncf %172 : vector<16x32xf32> to vector<16x32xbf16>
    %c0_59 = arith.constant 0 : index
    %c0_60 = arith.constant 0 : index
    %c0_61 = arith.constant 0 : index
    %174 = vector.load %arg11[%c0_59, %c0_60, %c0_61] : memref<2x32x128xbf16, #tpu.memory_space<vmem>>, vector<1x32x128xbf16>
    %175 = vector.shape_cast %174 : vector<1x32x128xbf16> to vector<32x128xbf16>
    %cst_62 = arith.constant dense<0.000000e+00> : vector<16x128xf32>
    %176 = tpu.matmul %173, %175, %cst_62 {dimension_numbers = #tpu.dot_dimension_numbers<[1], [0], [0], [1], [0, 0, 1, 1], [], []>} : vector<16x32xbf16>, vector<32x128xbf16>, vector<16x128xf32> -> vector<16x128xf32>
    %c0_63 = arith.constant 0 : index
    %c0_64 = arith.constant 0 : index
    %c0_65 = arith.constant 0 : index
    %177 = vector.load %arg12[%c0_63, %c0_64, %c0_65] : memref<2x1x128xf32, #tpu.memory_space<vmem>>, vector<1x1x128xf32>
    %178 = vector.shape_cast %177 : vector<1x1x128xf32> to vector<1x128xf32>
    %179 = vector.broadcast %178 : vector<1x128xf32> to vector<16x128xf32>
    %180 = arith.addf %176, %179 : vector<16x128xf32>
    %cst_66 = arith.constant 5.000000e-01 : f32
    %181 = vector.broadcast %cst_66 : f32 to vector<16x128xf32>
    %182 = arith.mulf %181, %180 : vector<16x128xf32>
    %cst_67 = arith.constant 4.471500e-02 : f32
    %183 = vector.broadcast %cst_67 : f32 to vector<16x128xf32>
    %184 = arith.mulf %183, %180 : vector<16x128xf32>
    %185 = arith.mulf %184, %180 : vector<16x128xf32>
    %186 = arith.mulf %185, %180 : vector<16x128xf32>
    %187 = arith.addf %180, %186 : vector<16x128xf32>
    %cst_68 = arith.constant 0.797884583 : f32
    %188 = vector.broadcast %cst_68 : f32 to vector<16x128xf32>
    %189 = arith.mulf %188, %187 : vector<16x128xf32>
    %190 = math.tanh %189 : vector<16x128xf32>
    %cst_69 = arith.constant 1.000000e+00 : f32
    %191 = vector.broadcast %cst_69 : f32 to vector<16x128xf32>
    %192 = arith.addf %191, %190 : vector<16x128xf32>
    %193 = arith.mulf %182, %192 : vector<16x128xf32>
    %194 = arith.truncf %193 : vector<16x128xf32> to vector<16x128xbf16>
    %c0_70 = arith.constant 0 : index
    %c0_71 = arith.constant 0 : index
    %c0_72 = arith.constant 0 : index
    %195 = vector.load %arg13[%c0_70, %c0_71, %c0_72] : memref<2x128x32xbf16, #tpu.memory_space<vmem>>, vector<1x128x32xbf16>
    %196 = vector.shape_cast %195 : vector<1x128x32xbf16> to vector<128x32xbf16>
    %cst_73 = arith.constant dense<0.000000e+00> : vector<16x32xf32>
    %197 = tpu.matmul %194, %196, %cst_73 {dimension_numbers = #tpu.dot_dimension_numbers<[1], [0], [0], [1], [0, 0, 1, 1], [], []>} : vector<16x128xbf16>, vector<128x32xbf16>, vector<16x32xf32> -> vector<16x32xf32>
    %c0_74 = arith.constant 0 : index
    %c0_75 = arith.constant 0 : index
    %c0_76 = arith.constant 0 : index
    %198 = vector.load %arg14[%c0_74, %c0_75, %c0_76] : memref<2x1x32xf32, #tpu.memory_space<vmem>>, vector<1x1x32xf32>
    %199 = vector.shape_cast %198 : vector<1x1x32xf32> to vector<1x32xf32>
    %200 = vector.broadcast %199 : vector<1x32xf32> to vector<16x32xf32>
    %201 = arith.addf %197, %200 : vector<16x32xf32>
    %202 = arith.addf %148, %201 : vector<16x32xf32>
    %c1 = arith.constant 1 : index
    %c0_77 = arith.constant 0 : index
    %c0_78 = arith.constant 0 : index
    %203 = vector.load %arg3[%c1, %c0_77, %c0_78] : memref<2x1x32xf32, #tpu.memory_space<vmem>>, vector<1x1x32xf32>
    %204 = vector.shape_cast %203 : vector<1x1x32xf32> to vector<1x32xf32>
    %c1_79 = arith.constant 1 : index
    %c0_80 = arith.constant 0 : index
    %c0_81 = arith.constant 0 : index
    %205 = vector.load %arg4[%c1_79, %c0_80, %c0_81] : memref<2x1x32xf32, #tpu.memory_space<vmem>>, vector<1x1x32xf32>
    %206 = vector.shape_cast %205 : vector<1x1x32xf32> to vector<1x32xf32>
    %cst_82 = arith.constant dense<0.000000e+00> : vector<16xf32>
    %207 = vector.multi_reduction <add>, %202, %cst_82 [1] : vector<16x32xf32> to vector<16xf32>
    %208 = vector.shape_cast %207 : vector<16xf32> to vector<16x1xf32>
    %cst_83 = arith.constant 3.200000e+01 : f32
    %209 = vector.broadcast %cst_83 : f32 to vector<16x1xf32>
    %210 = arith.divf %208, %209 : vector<16x1xf32>
    %211 = vector.broadcast %210 : vector<16x1xf32> to vector<16x32xf32>
    %212 = arith.subf %202, %211 : vector<16x32xf32>
    %213 = arith.mulf %212, %212 : vector<16x32xf32>
    %cst_84 = arith.constant dense<0.000000e+00> : vector<16xf32>
    %214 = vector.multi_reduction <add>, %213, %cst_84 [1] : vector<16x32xf32> to vector<16xf32>
    %215 = vector.shape_cast %214 : vector<16xf32> to vector<16x1xf32>
    %cst_85 = arith.constant 3.200000e+01 : f32
    %216 = vector.broadcast %cst_85 : f32 to vector<16x1xf32>
    %217 = arith.divf %215, %216 : vector<16x1xf32>
    %cst_86 = arith.constant 9.99999974E-6 : f32
    %218 = vector.broadcast %cst_86 : f32 to vector<16x1xf32>
    %219 = arith.addf %217, %218 : vector<16x1xf32>
    %220 = math.sqrt %219 : vector<16x1xf32>
    %221 = vector.broadcast %220 : vector<16x1xf32> to vector<16x32xf32>
    %222 = arith.divf %212, %221 : vector<16x32xf32>
    %223 = vector.broadcast %204 : vector<1x32xf32> to vector<16x32xf32>
    %224 = arith.mulf %222, %223 : vector<16x32xf32>
    %225 = vector.broadcast %206 : vector<1x32xf32> to vector<16x32xf32>
    %226 = arith.addf %224, %225 : vector<16x32xf32>
    %227 = arith.truncf %226 : vector<16x32xf32> to vector<16x32xbf16>
    %c1_87 = arith.constant 1 : index
    %c0_88 = arith.constant 0 : index
    %c0_89 = arith.constant 0 : index
    %228 = vector.load %arg5[%c1_87, %c0_88, %c0_89] : memref<2x32x96xbf16, #tpu.memory_space<vmem>>, vector<1x32x96xbf16>
    %229 = vector.shape_cast %228 : vector<1x32x96xbf16> to vector<32x96xbf16>
    %cst_90 = arith.constant dense<0.000000e+00> : vector<16x96xf32>
    %230 = tpu.matmul %227, %229, %cst_90 {dimension_numbers = #tpu.dot_dimension_numbers<[1], [0], [0], [1], [0, 0, 1, 1], [], []>} : vector<16x32xbf16>, vector<32x96xbf16>, vector<16x96xf32> -> vector<16x96xf32>
    %c1_91 = arith.constant 1 : index
    %c0_92 = arith.constant 0 : index
    %c0_93 = arith.constant 0 : index
    %231 = vector.load %arg6[%c1_91, %c0_92, %c0_93] : memref<2x1x96xf32, #tpu.memory_space<vmem>>, vector<1x1x96xf32>
    %232 = vector.shape_cast %231 : vector<1x1x96xf32> to vector<1x96xf32>
    %233 = vector.broadcast %232 : vector<1x96xf32> to vector<16x96xf32>
    %234 = arith.addf %230, %233 : vector<16x96xf32>
    %235 = vector.extract_strided_slice %234 {offsets = [0, 0], sizes = [16, 8], strides = [1, 1]} : vector<16x96xf32> to vector<16x8xf32>
    %236 = vector.shape_cast %235 : vector<16x8xf32> to vector<2x8x8xf32>
    %237 = vector.extract_strided_slice %234 {offsets = [0, 32], sizes = [16, 8], strides = [1, 1]} : vector<16x96xf32> to vector<16x8xf32>
    %238 = vector.shape_cast %237 : vector<16x8xf32> to vector<2x8x8xf32>
    %239 = vector.extract_strided_slice %234 {offsets = [0, 64], sizes = [16, 8], strides = [1, 1]} : vector<16x96xf32> to vector<16x8xf32>
    %240 = vector.shape_cast %239 : vector<16x8xf32> to vector<2x8x8xf32>
    "tpu.trace_start"() <{level = 10 : i32, message = "bqd,bkd->bqk"}> : () -> ()
    %cst_94 = arith.constant dense<0.000000e+00> : vector<2x8x8xf32>
    %241 = tpu.matmul %236, %238, %cst_94 {dimension_numbers = #tpu.dot_dimension_numbers<[2], [2], [1], [1], [0, 0, 0, 1, 1, 1], [0], [0]>} : vector<2x8x8xf32>, vector<2x8x8xf32>, vector<2x8x8xf32> -> vector<2x8x8xf32>
    "tpu.trace_stop"() : () -> ()
    %242 = vector.shape_cast %18 : vector<8x8xf32> to vector<1x8x8xf32>
    %243 = vector.broadcast %242 : vector<1x8x8xf32> to vector<2x8x8xf32>
    %244 = arith.addf %241, %243 : vector<2x8x8xf32>
    %cst_95 = arith.constant dense<0xFF800000> : vector<2x8xf32>
    %245 = vector.multi_reduction <maximumf>, %244, %cst_95 [2] : vector<2x8x8xf32> to vector<2x8xf32>
    %246 = vector.shape_cast %245 : vector<2x8xf32> to vector<2x8x1xf32>
    %247 = vector.broadcast %246 : vector<2x8x1xf32> to vector<2x8x8xf32>
    %248 = arith.subf %244, %247 : vector<2x8x8xf32>
    %249 = math.exp %248 : vector<2x8x8xf32>
    %cst_96 = arith.constant dense<0.000000e+00> : vector<2x8xf32>
    %250 = vector.multi_reduction <add>, %249, %cst_96 [2] : vector<2x8x8xf32> to vector<2x8xf32>
    %251 = vector.shape_cast %250 : vector<2x8xf32> to vector<2x8x1xf32>
    %252 = tpu.reciprocal %251 {approx = true} : vector<2x8x1xf32> -> vector<2x8x1xf32>
    %253 = vector.broadcast %252 : vector<2x8x1xf32> to vector<2x8x8xf32>
    %254 = arith.mulf %249, %253 : vector<2x8x8xf32>
    "tpu.trace_start"() <{level = 10 : i32, message = "bqk,bkd->bqd"}> : () -> ()
    %cst_97 = arith.constant dense<0.000000e+00> : vector<2x8x8xf32>
    %255 = tpu.matmul %254, %240, %cst_97 {dimension_numbers = #tpu.dot_dimension_numbers<[2], [1], [1], [2], [0, 0, 0, 1, 1, 2], [0], [0]>} : vector<2x8x8xf32>, vector<2x8x8xf32>, vector<2x8x8xf32> -> vector<2x8x8xf32>
    "tpu.trace_stop"() : () -> ()
    %256 = vector.shape_cast %255 : vector<2x8x8xf32> to vector<16x8xf32>
    %257 = vector.extract_strided_slice %234 {offsets = [0, 8], sizes = [16, 8], strides = [1, 1]} : vector<16x96xf32> to vector<16x8xf32>
    %258 = vector.shape_cast %257 : vector<16x8xf32> to vector<2x8x8xf32>
    %259 = vector.extract_strided_slice %234 {offsets = [0, 40], sizes = [16, 8], strides = [1, 1]} : vector<16x96xf32> to vector<16x8xf32>
    %260 = vector.shape_cast %259 : vector<16x8xf32> to vector<2x8x8xf32>
    %261 = vector.extract_strided_slice %234 {offsets = [0, 72], sizes = [16, 8], strides = [1, 1]} : vector<16x96xf32> to vector<16x8xf32>
    %262 = vector.shape_cast %261 : vector<16x8xf32> to vector<2x8x8xf32>
    "tpu.trace_start"() <{level = 10 : i32, message = "bqd,bkd->bqk"}> : () -> ()
    %cst_98 = arith.constant dense<0.000000e+00> : vector<2x8x8xf32>
    %263 = tpu.matmul %258, %260, %cst_98 {dimension_numbers = #tpu.dot_dimension_numbers<[2], [2], [1], [1], [0, 0, 0, 1, 1, 1], [0], [0]>} : vector<2x8x8xf32>, vector<2x8x8xf32>, vector<2x8x8xf32> -> vector<2x8x8xf32>
    "tpu.trace_stop"() : () -> ()
    %264 = vector.shape_cast %18 : vector<8x8xf32> to vector<1x8x8xf32>
    %265 = vector.broadcast %264 : vector<1x8x8xf32> to vector<2x8x8xf32>
    %266 = arith.addf %263, %265 : vector<2x8x8xf32>
    %cst_99 = arith.constant dense<0xFF800000> : vector<2x8xf32>
    %267 = vector.multi_reduction <maximumf>, %266, %cst_99 [2] : vector<2x8x8xf32> to vector<2x8xf32>
    %268 = vector.shape_cast %267 : vector<2x8xf32> to vector<2x8x1xf32>
    %269 = vector.broadcast %268 : vector<2x8x1xf32> to vector<2x8x8xf32>
    %270 = arith.subf %266, %269 : vector<2x8x8xf32>
    %271 = math.exp %270 : vector<2x8x8xf32>
    %cst_100 = arith.constant dense<0.000000e+00> : vector<2x8xf32>
    %272 = vector.multi_reduction <add>, %271, %cst_100 [2] : vector<2x8x8xf32> to vector<2x8xf32>
    %273 = vector.shape_cast %272 : vector<2x8xf32> to vector<2x8x1xf32>
    %274 = tpu.reciprocal %273 {approx = true} : vector<2x8x1xf32> -> vector<2x8x1xf32>
    %275 = vector.broadcast %274 : vector<2x8x1xf32> to vector<2x8x8xf32>
    %276 = arith.mulf %271, %275 : vector<2x8x8xf32>
    "tpu.trace_start"() <{level = 10 : i32, message = "bqk,bkd->bqd"}> : () -> ()
    %cst_101 = arith.constant dense<0.000000e+00> : vector<2x8x8xf32>
    %277 = tpu.matmul %276, %262, %cst_101 {dimension_numbers = #tpu.dot_dimension_numbers<[2], [1], [1], [2], [0, 0, 0, 1, 1, 2], [0], [0]>} : vector<2x8x8xf32>, vector<2x8x8xf32>, vector<2x8x8xf32> -> vector<2x8x8xf32>
    "tpu.trace_stop"() : () -> ()
    %278 = vector.shape_cast %277 : vector<2x8x8xf32> to vector<16x8xf32>
    %279 = vector.extract_strided_slice %234 {offsets = [0, 16], sizes = [16, 8], strides = [1, 1]} : vector<16x96xf32> to vector<16x8xf32>
    %280 = vector.shape_cast %279 : vector<16x8xf32> to vector<2x8x8xf32>
    %281 = vector.extract_strided_slice %234 {offsets = [0, 48], sizes = [16, 8], strides = [1, 1]} : vector<16x96xf32> to vector<16x8xf32>
    %282 = vector.shape_cast %281 : vector<16x8xf32> to vector<2x8x8xf32>
    %283 = vector.extract_strided_slice %234 {offsets = [0, 80], sizes = [16, 8], strides = [1, 1]} : vector<16x96xf32> to vector<16x8xf32>
    %284 = vector.shape_cast %283 : vector<16x8xf32> to vector<2x8x8xf32>
    "tpu.trace_start"() <{level = 10 : i32, message = "bqd,bkd->bqk"}> : () -> ()
    %cst_102 = arith.constant dense<0.000000e+00> : vector<2x8x8xf32>
    %285 = tpu.matmul %280, %282, %cst_102 {dimension_numbers = #tpu.dot_dimension_numbers<[2], [2], [1], [1], [0, 0, 0, 1, 1, 1], [0], [0]>} : vector<2x8x8xf32>, vector<2x8x8xf32>, vector<2x8x8xf32> -> vector<2x8x8xf32>
    "tpu.trace_stop"() : () -> ()
    %286 = vector.shape_cast %18 : vector<8x8xf32> to vector<1x8x8xf32>
    %287 = vector.broadcast %286 : vector<1x8x8xf32> to vector<2x8x8xf32>
    %288 = arith.addf %285, %287 : vector<2x8x8xf32>
    %cst_103 = arith.constant dense<0xFF800000> : vector<2x8xf32>
    %289 = vector.multi_reduction <maximumf>, %288, %cst_103 [2] : vector<2x8x8xf32> to vector<2x8xf32>
    %290 = vector.shape_cast %289 : vector<2x8xf32> to vector<2x8x1xf32>
    %291 = vector.broadcast %290 : vector<2x8x1xf32> to vector<2x8x8xf32>
    %292 = arith.subf %288, %291 : vector<2x8x8xf32>
    %293 = math.exp %292 : vector<2x8x8xf32>
    %cst_104 = arith.constant dense<0.000000e+00> : vector<2x8xf32>
    %294 = vector.multi_reduction <add>, %293, %cst_104 [2] : vector<2x8x8xf32> to vector<2x8xf32>
    %295 = vector.shape_cast %294 : vector<2x8xf32> to vector<2x8x1xf32>
    %296 = tpu.reciprocal %295 {approx = true} : vector<2x8x1xf32> -> vector<2x8x1xf32>
    %297 = vector.broadcast %296 : vector<2x8x1xf32> to vector<2x8x8xf32>
    %298 = arith.mulf %293, %297 : vector<2x8x8xf32>
    "tpu.trace_start"() <{level = 10 : i32, message = "bqk,bkd->bqd"}> : () -> ()
    %cst_105 = arith.constant dense<0.000000e+00> : vector<2x8x8xf32>
    %299 = tpu.matmul %298, %284, %cst_105 {dimension_numbers = #tpu.dot_dimension_numbers<[2], [1], [1], [2], [0, 0, 0, 1, 1, 2], [0], [0]>} : vector<2x8x8xf32>, vector<2x8x8xf32>, vector<2x8x8xf32> -> vector<2x8x8xf32>
    "tpu.trace_stop"() : () -> ()
    %300 = vector.shape_cast %299 : vector<2x8x8xf32> to vector<16x8xf32>
    %301 = vector.extract_strided_slice %234 {offsets = [0, 24], sizes = [16, 8], strides = [1, 1]} : vector<16x96xf32> to vector<16x8xf32>
    %302 = vector.shape_cast %301 : vector<16x8xf32> to vector<2x8x8xf32>
    %303 = vector.extract_strided_slice %234 {offsets = [0, 56], sizes = [16, 8], strides = [1, 1]} : vector<16x96xf32> to vector<16x8xf32>
    %304 = vector.shape_cast %303 : vector<16x8xf32> to vector<2x8x8xf32>
    %305 = vector.extract_strided_slice %234 {offsets = [0, 88], sizes = [16, 8], strides = [1, 1]} : vector<16x96xf32> to vector<16x8xf32>
    %306 = vector.shape_cast %305 : vector<16x8xf32> to vector<2x8x8xf32>
    "tpu.trace_start"() <{level = 10 : i32, message = "bqd,bkd->bqk"}> : () -> ()
    %cst_106 = arith.constant dense<0.000000e+00> : vector<2x8x8xf32>
    %307 = tpu.matmul %302, %304, %cst_106 {dimension_numbers = #tpu.dot_dimension_numbers<[2], [2], [1], [1], [0, 0, 0, 1, 1, 1], [0], [0]>} : vector<2x8x8xf32>, vector<2x8x8xf32>, vector<2x8x8xf32> -> vector<2x8x8xf32>
    "tpu.trace_stop"() : () -> ()
    %308 = vector.shape_cast %18 : vector<8x8xf32> to vector<1x8x8xf32>
    %309 = vector.broadcast %308 : vector<1x8x8xf32> to vector<2x8x8xf32>
    %310 = arith.addf %307, %309 : vector<2x8x8xf32>
    %cst_107 = arith.constant dense<0xFF800000> : vector<2x8xf32>
    %311 = vector.multi_reduction <maximumf>, %310, %cst_107 [2] : vector<2x8x8xf32> to vector<2x8xf32>
    %312 = vector.shape_cast %311 : vector<2x8xf32> to vector<2x8x1xf32>
    %313 = vector.broadcast %312 : vector<2x8x1xf32> to vector<2x8x8xf32>
    %314 = arith.subf %310, %313 : vector<2x8x8xf32>
    %315 = math.exp %314 : vector<2x8x8xf32>
    %cst_108 = arith.constant dense<0.000000e+00> : vector<2x8xf32>
    %316 = vector.multi_reduction <add>, %315, %cst_108 [2] : vector<2x8x8xf32> to vector<2x8xf32>
    %317 = vector.shape_cast %316 : vector<2x8xf32> to vector<2x8x1xf32>
    %318 = tpu.reciprocal %317 {approx = true} : vector<2x8x1xf32> -> vector<2x8x1xf32>
    %319 = vector.broadcast %318 : vector<2x8x1xf32> to vector<2x8x8xf32>
    %320 = arith.mulf %315, %319 : vector<2x8x8xf32>
    "tpu.trace_start"() <{level = 10 : i32, message = "bqk,bkd->bqd"}> : () -> ()
    %cst_109 = arith.constant dense<0.000000e+00> : vector<2x8x8xf32>
    %321 = tpu.matmul %320, %306, %cst_109 {dimension_numbers = #tpu.dot_dimension_numbers<[2], [1], [1], [2], [0, 0, 0, 1, 1, 2], [0], [0]>} : vector<2x8x8xf32>, vector<2x8x8xf32>, vector<2x8x8xf32> -> vector<2x8x8xf32>
    "tpu.trace_stop"() : () -> ()
    %322 = vector.shape_cast %321 : vector<2x8x8xf32> to vector<16x8xf32>
    %323 = tpu.concatenate %256, %278, %300, %322 in 1 : vector<16x8xf32>, vector<16x8xf32>, vector<16x8xf32>, vector<16x8xf32> -> vector<16x32xf32>
    %324 = arith.truncf %323 : vector<16x32xf32> to vector<16x32xbf16>
    %c1_110 = arith.constant 1 : index
    %c0_111 = arith.constant 0 : index
    %c0_112 = arith.constant 0 : index
    %325 = vector.load %arg7[%c1_110, %c0_111, %c0_112] : memref<2x32x32xbf16, #tpu.memory_space<vmem>>, vector<1x32x32xbf16>
    %326 = vector.shape_cast %325 : vector<1x32x32xbf16> to vector<32x32xbf16>
    %cst_113 = arith.constant dense<0.000000e+00> : vector<16x32xf32>
    %327 = tpu.matmul %324, %326, %cst_113 {dimension_numbers = #tpu.dot_dimension_numbers<[1], [0], [0], [1], [0, 0, 1, 1], [], []>} : vector<16x32xbf16>, vector<32x32xbf16>, vector<16x32xf32> -> vector<16x32xf32>
    %c1_114 = arith.constant 1 : index
    %c0_115 = arith.constant 0 : index
    %c0_116 = arith.constant 0 : index
    %328 = vector.load %arg8[%c1_114, %c0_115, %c0_116] : memref<2x1x32xf32, #tpu.memory_space<vmem>>, vector<1x1x32xf32>
    %329 = vector.shape_cast %328 : vector<1x1x32xf32> to vector<1x32xf32>
    %330 = vector.broadcast %329 : vector<1x32xf32> to vector<16x32xf32>
    %331 = arith.addf %327, %330 : vector<16x32xf32>
    %332 = arith.addf %202, %331 : vector<16x32xf32>
    %c1_117 = arith.constant 1 : index
    %c0_118 = arith.constant 0 : index
    %c0_119 = arith.constant 0 : index
    %333 = vector.load %arg9[%c1_117, %c0_118, %c0_119] : memref<2x1x32xf32, #tpu.memory_space<vmem>>, vector<1x1x32xf32>
    %334 = vector.shape_cast %333 : vector<1x1x32xf32> to vector<1x32xf32>
    %c1_120 = arith.constant 1 : index
    %c0_121 = arith.constant 0 : index
    %c0_122 = arith.constant 0 : index
    %335 = vector.load %arg10[%c1_120, %c0_121, %c0_122] : memref<2x1x32xf32, #tpu.memory_space<vmem>>, vector<1x1x32xf32>
    %336 = vector.shape_cast %335 : vector<1x1x32xf32> to vector<1x32xf32>
    %cst_123 = arith.constant dense<0.000000e+00> : vector<16xf32>
    %337 = vector.multi_reduction <add>, %332, %cst_123 [1] : vector<16x32xf32> to vector<16xf32>
    %338 = vector.shape_cast %337 : vector<16xf32> to vector<16x1xf32>
    %cst_124 = arith.constant 3.200000e+01 : f32
    %339 = vector.broadcast %cst_124 : f32 to vector<16x1xf32>
    %340 = arith.divf %338, %339 : vector<16x1xf32>
    %341 = vector.broadcast %340 : vector<16x1xf32> to vector<16x32xf32>
    %342 = arith.subf %332, %341 : vector<16x32xf32>
    %343 = arith.mulf %342, %342 : vector<16x32xf32>
    %cst_125 = arith.constant dense<0.000000e+00> : vector<16xf32>
    %344 = vector.multi_reduction <add>, %343, %cst_125 [1] : vector<16x32xf32> to vector<16xf32>
    %345 = vector.shape_cast %344 : vector<16xf32> to vector<16x1xf32>
    %cst_126 = arith.constant 3.200000e+01 : f32
    %346 = vector.broadcast %cst_126 : f32 to vector<16x1xf32>
    %347 = arith.divf %345, %346 : vector<16x1xf32>
    %cst_127 = arith.constant 9.99999974E-6 : f32
    %348 = vector.broadcast %cst_127 : f32 to vector<16x1xf32>
    %349 = arith.addf %347, %348 : vector<16x1xf32>
    %350 = math.sqrt %349 : vector<16x1xf32>
    %351 = vector.broadcast %350 : vector<16x1xf32> to vector<16x32xf32>
    %352 = arith.divf %342, %351 : vector<16x32xf32>
    %353 = vector.broadcast %334 : vector<1x32xf32> to vector<16x32xf32>
    %354 = arith.mulf %352, %353 : vector<16x32xf32>
    %355 = vector.broadcast %336 : vector<1x32xf32> to vector<16x32xf32>
    %356 = arith.addf %354, %355 : vector<16x32xf32>
    %357 = arith.truncf %356 : vector<16x32xf32> to vector<16x32xbf16>
    %c1_128 = arith.constant 1 : index
    %c0_129 = arith.constant 0 : index
    %c0_130 = arith.constant 0 : index
    %358 = vector.load %arg11[%c1_128, %c0_129, %c0_130] : memref<2x32x128xbf16, #tpu.memory_space<vmem>>, vector<1x32x128xbf16>
    %359 = vector.shape_cast %358 : vector<1x32x128xbf16> to vector<32x128xbf16>
    %cst_131 = arith.constant dense<0.000000e+00> : vector<16x128xf32>
    %360 = tpu.matmul %357, %359, %cst_131 {dimension_numbers = #tpu.dot_dimension_numbers<[1], [0], [0], [1], [0, 0, 1, 1], [], []>} : vector<16x32xbf16>, vector<32x128xbf16>, vector<16x128xf32> -> vector<16x128xf32>
    %c1_132 = arith.constant 1 : index
    %c0_133 = arith.constant 0 : index
    %c0_134 = arith.constant 0 : index
    %361 = vector.load %arg12[%c1_132, %c0_133, %c0_134] : memref<2x1x128xf32, #tpu.memory_space<vmem>>, vector<1x1x128xf32>
    %362 = vector.shape_cast %361 : vector<1x1x128xf32> to vector<1x128xf32>
    %363 = vector.broadcast %362 : vector<1x128xf32> to vector<16x128xf32>
    %364 = arith.addf %360, %363 : vector<16x128xf32>
    %cst_135 = arith.constant 5.000000e-01 : f32
    %365 = vector.broadcast %cst_135 : f32 to vector<16x128xf32>
    %366 = arith.mulf %365, %364 : vector<16x128xf32>
    %cst_136 = arith.constant 4.471500e-02 : f32
    %367 = vector.broadcast %cst_136 : f32 to vector<16x128xf32>
    %368 = arith.mulf %367, %364 : vector<16x128xf32>
    %369 = arith.mulf %368, %364 : vector<16x128xf32>
    %370 = arith.mulf %369, %364 : vector<16x128xf32>
    %371 = arith.addf %364, %370 : vector<16x128xf32>
    %cst_137 = arith.constant 0.797884583 : f32
    %372 = vector.broadcast %cst_137 : f32 to vector<16x128xf32>
    %373 = arith.mulf %372, %371 : vector<16x128xf32>
    %374 = math.tanh %373 : vector<16x128xf32>
    %cst_138 = arith.constant 1.000000e+00 : f32
    %375 = vector.broadcast %cst_138 : f32 to vector<16x128xf32>
    %376 = arith.addf %375, %374 : vector<16x128xf32>
    %377 = arith.mulf %366, %376 : vector<16x128xf32>
    %378 = arith.truncf %377 : vector<16x128xf32> to vector<16x128xbf16>
    %c1_139 = arith.constant 1 : index
    %c0_140 = arith.constant 0 : index
    %c0_141 = arith.constant 0 : index
    %379 = vector.load %arg13[%c1_139, %c0_140, %c0_141] : memref<2x128x32xbf16, #tpu.memory_space<vmem>>, vector<1x128x32xbf16>
    %380 = vector.shape_cast %379 : vector<1x128x32xbf16> to vector<128x32xbf16>
    %cst_142 = arith.constant dense<0.000000e+00> : vector<16x32xf32>
    %381 = tpu.matmul %378, %380, %cst_142 {dimension_numbers = #tpu.dot_dimension_numbers<[1], [0], [0], [1], [0, 0, 1, 1], [], []>} : vector<16x128xbf16>, vector<128x32xbf16>, vector<16x32xf32> -> vector<16x32xf32>
    %c1_143 = arith.constant 1 : index
    %c0_144 = arith.constant 0 : index
    %c0_145 = arith.constant 0 : index
    %382 = vector.load %arg14[%c1_143, %c0_144, %c0_145] : memref<2x1x32xf32, #tpu.memory_space<vmem>>, vector<1x1x32xf32>
    %383 = vector.shape_cast %382 : vector<1x1x32xf32> to vector<1x32xf32>
    %384 = vector.broadcast %383 : vector<1x32xf32> to vector<16x32xf32>
    %385 = arith.addf %381, %384 : vector<16x32xf32>
    %386 = arith.addf %332, %385 : vector<16x32xf32>
    %c0_146 = arith.constant 0 : index
    %c0_147 = arith.constant 0 : index
    %387 = vector.load %arg15[%c0_146, %c0_147] : memref<1x32xf32, #tpu.memory_space<vmem>>, vector<1x32xf32>
    %c0_148 = arith.constant 0 : index
    %c0_149 = arith.constant 0 : index
    %388 = vector.load %arg16[%c0_148, %c0_149] : memref<1x32xf32, #tpu.memory_space<vmem>>, vector<1x32xf32>
    %cst_150 = arith.constant dense<0.000000e+00> : vector<16xf32>
    %389 = vector.multi_reduction <add>, %386, %cst_150 [1] : vector<16x32xf32> to vector<16xf32>
    %390 = vector.shape_cast %389 : vector<16xf32> to vector<16x1xf32>
    %cst_151 = arith.constant 3.200000e+01 : f32
    %391 = vector.broadcast %cst_151 : f32 to vector<16x1xf32>
    %392 = arith.divf %390, %391 : vector<16x1xf32>
    %393 = vector.broadcast %392 : vector<16x1xf32> to vector<16x32xf32>
    %394 = arith.subf %386, %393 : vector<16x32xf32>
    %395 = arith.mulf %394, %394 : vector<16x32xf32>
    %cst_152 = arith.constant dense<0.000000e+00> : vector<16xf32>
    %396 = vector.multi_reduction <add>, %395, %cst_152 [1] : vector<16x32xf32> to vector<16xf32>
    %397 = vector.shape_cast %396 : vector<16xf32> to vector<16x1xf32>
    %cst_153 = arith.constant 3.200000e+01 : f32
    %398 = vector.broadcast %cst_153 : f32 to vector<16x1xf32>
    %399 = arith.divf %397, %398 : vector<16x1xf32>
    %cst_154 = arith.constant 9.99999974E-6 : f32
    %400 = vector.broadcast %cst_154 : f32 to vector<16x1xf32>
    %401 = arith.addf %399, %400 : vector<16x1xf32>
    %402 = math.sqrt %401 : vector<16x1xf32>
    %403 = vector.broadcast %402 : vector<16x1xf32> to vector<16x32xf32>
    %404 = arith.divf %394, %403 : vector<16x32xf32>
    %405 = vector.broadcast %387 : vector<1x32xf32> to vector<16x32xf32>
    %406 = arith.mulf %404, %405 : vector<16x32xf32>
    %407 = vector.broadcast %388 : vector<1x32xf32> to vector<16x32xf32>
    %408 = arith.addf %406, %407 : vector<16x32xf32>
    %409 = arith.truncf %408 : vector<16x32xf32> to vector<16x32xbf16>
    %c0_155 = arith.constant 0 : index
    %c0_156 = arith.constant 0 : index
    %410 = vector.load %arg17[%c0_155, %c0_156] : memref<32x128xbf16, #tpu.memory_space<vmem>>, vector<32x128xbf16>
    %cst_157 = arith.constant dense<0.000000e+00> : vector<16x128xf32>
    %411 = tpu.matmul %409, %410, %cst_157 {dimension_numbers = #tpu.dot_dimension_numbers<[1], [0], [0], [1], [0, 0, 1, 1], [], []>} : vector<16x32xbf16>, vector<32x128xbf16>, vector<16x128xf32> -> vector<16x128xf32>
    %c0_158 = arith.constant 0 : index
    %c0_159 = arith.constant 0 : index
    %412 = vector.load %arg18[%c0_158, %c0_159] : memref<1x128xf32, #tpu.memory_space<vmem>>, vector<1x128xf32>
    %413 = vector.broadcast %412 : vector<1x128xf32> to vector<16x128xf32>
    %414 = arith.addf %411, %413 : vector<16x128xf32>
    %c0_160 = arith.constant 0 : index
    %c0_161 = arith.constant 0 : index
    %415 = vector.load %arg19[%c0_160, %c0_161] : memref<16x128xf32, #tpu.memory_space<vmem>>, vector<16x128xf32>
    tpu.vector_store %arg19[%c0_160, %c0_161], %414 {strides = array<i32>} : memref<16x128xf32, #tpu.memory_space<vmem>>, vector<16x128xf32>,
    return
  }
}

</mosaic_0001>

<bundles_post_ra>
// kernel: tpu_custom_call.1
= control target key start
LH: loop header
LB: loop body
LE: loop exit
PB: predicated region body
PF: predicated region fallthrough
CT: control target
= control target key end

     0   :  { %s3410_s0 = inlined_call_operand.vmem [shape: s32[16,1], index: 0, kind: input, shape index: {}]   ;;  %s3411_s1 = inlined_call_operand.vmem [shape: bf16[128,32], index: 1, kind: input, shape index: {}]   ;;  %s3412_s2 = inlined_call_operand.vmem [shape: f32[16,32], index: 2, kind: input, shape index: {}]   ;;  %s3413_s3 = inlined_call_operand.vmem [shape: f32[2,1,32], index: 3, kind: input, shape index: {}]   ;;  %s3414_s4 = inlined_call_operand.vmem [shape: f32[2,1,32], index: 4, kind: input, shape index: {}]   ;;  %s3415_s5 = inlined_call_operand.vmem [shape: bf16[2,32,96], index: 5, kind: input, shape index: {}]   ;;  %s3416_s6 = inlined_call_operand.vmem [shape: f32[2,1,96], index: 6, kind: input, shape index: {}]   ;;  %s3417_s7 = inlined_call_operand.vmem [shape: bf16[2,32,32], index: 7, kind: input, shape index: {}]   ;;  %s3418_s8 = inlined_call_operand.vmem [shape: f32[2,1,32], index: 8, kind: input, shape index: {}]   ;;  %s3419_s9 = inlined_call_operand.vmem [shape: f32[2,1,32], index: 9, kind: input, shape index: {}]   ;;  %s3420_s10 = inlined_call_operand.vmem [shape: f32[2,1,32], index: 10, kind: input, shape index: {}]   ;;  %s3421_s11 = inlined_call_operand.vmem [shape: bf16[2,32,128], index: 11, kind: input, shape index: {}]   ;;  %s3422_s12 = inlined_call_operand.vmem [shape: f32[2,1,128], index: 12, kind: input, shape index: {}]   ;;  %s3423_s13 = inlined_call_operand.vmem [shape: bf16[2,128,32], index: 13, kind: input, shape index: {}]   ;;  %s3424_s14 = inlined_call_operand.vmem [shape: f32[2,1,32], index: 14, kind: input, shape index: {}]   ;;  %s3425_s15 = inlined_call_operand.vmem [shape: f32[1,32], index: 15, kind: input, shape index: {}]   ;;  %s3426_s16 = inlined_call_operand.vmem [shape: f32[1,32], index: 16, kind: input, shape index: {}]   ;;  %s3427_s17 = inlined_call_operand.vmem [shape: bf16[32,128], index: 17, kind: input, shape index: {}]   ;;  %s3428_s18 = inlined_call_operand.vmem [shape: f32[1,128], index: 18, kind: input, shape index: {}]   ;;  %s3429_s19 = inlined_call_operand.hbm [shape: f32[16,128], index: 19, kind: output, shape index: {}]  }
   0x1   :  { %3447 = sst [smem:[#allocation5_spill]] %s3410_s0 }
   0x2   :  { %3448 = sst [smem:[#allocation6_spill]] %s3411_s1 }
   0x3   :  { %3449 = sst [smem:[#allocation7_spill]] %s3412_s2 }
   0x4   :  { %3450 = sst [smem:[#allocation8_spill]] %s3413_s3 }
   0x5   :  { %3451 = sst [smem:[#allocation9_spill]] %s3424_s14 }
   0x6   :  { %s3452_s20 = sld [smem:[#allocation5_spill]]  ;;  %v2739_v2 = vmov 0  }
   0x7   :  { %s3453_s14 = sld [smem:[#allocation6_spill]]  ;;  %2524 = vset.pattern.permute.xlu0 %v2739_v2 }
   0xc   :  { %v66_v0 = vld [vmem:[%s3452_s20] sm:$0xff]  ;;  %v67_v5 = vld [vmem:[%s3452_s20 + $0x8] sm:$0xff] }
   0xd   :  { %v2473_v1 = vld [vmem:[%s3453_s14 + $0x38] sm:$0xff]  ;;  %69 = vperm.xlu0 %2524, %v66_v0   ;;  %v2472_v3 = vld [vmem:[%s3453_s14 + $0x30] sm:$0xff]  ;;  %v2471_v4 = vld [vmem:[%s3453_s14 + $0x28] sm:$0xff] }
   0xe   :  { %146 = vmatpush.bf16.msra.mxu0 %v2473_v1 }
  0x12   :  { %147 = vmatpush.bf16.msra.mxu0 %v2472_v3 }
  0x13   :  { %24 = vsyncpa [#allocation3], 0  ;;  %v2470_v6 = vld [vmem:[%s3453_s14 + $0x20] sm:$0xff]  ;;  %v2469_v7 = vld [vmem:[%s3453_s14 + $0x18] sm:$0xff]  ;;  %v64_v9 = vlaneseq  ;;  %v2740_v16 = vmov 1.0|1.0  }
  0x14   :  { %v2468_v8 = vld [vmem:[%s3453_s14 + $0x10] sm:$0xff]  ;;  %v2467_v12 = vld [vmem:[%s3453_s14 + $0x8] sm:$0xff]  ;;  %v2466_v13 = vld [vmem:[%s3453_s14] sm:$0xff]  ;;  %s3454_s24 = sld [smem:[#allocation7_spill]]  ;;  %vm166_vm4 = vcmask 261120   ;;  %v2741_v24 = vmov 32.0  }
  0x15   :  { %72 = vperm.xlu0 %2524, %v67_v5   ;;  %v2883_v10 = vand.u32 127, %v64_v9  ;;  %v2885_v11 = vshrl.u32 %v64_v9, 7  ;;  %2599 = vrcp.f32 %v2741_v24  ;;  %v2475_v41 = vld [vmem:[%s3415_s5 + $0x8] sm:$0xff]  ;;  %v2474_v43 = vld [vmem:[%s3415_s5] sm:$0xff]  ;;  %s3455_s29 = sld [smem:[#allocation8_spill]]  ;;  %s2742_s1 = smov 96  }
  0x16   :  { %148 = vmatpush.bf16.msra.mxu0 %v2471_v4  ;;  %290 = vmatpush.bf16.msra.mxu1 %v2475_v41  ;;  %s2743_s22 = smov 88   ;;  %s2744_s2 = smov 120  }
  0x17   :  { %vm162_vm0 = vcmp.gt.s32.totalorder %v2883_v10, %v2885_v11  ;;  %s2745_s23 = smov 80   ;;  %s3444_s14 = smov 112  }
  0x18   :  { %s3437_s25 = smov 48   ;;  %s2750_s3 = smov 56  }
  0x19   :  { %s3442_s26 = smov 72   ;;  %s3440_s27 = smov 104  }
  0x1a   :  { %149 = vmatpush.bf16.msra.mxu0 %v2470_v6  ;;  %v97_v17 = vld [vmem:[%s3454_s24] sm:$0xff]  ;;  %291 = vmatpush.bf16.msra.mxu1 %v2474_v43  ;;  %s3446_s24 = smov 64   ;;  %s3434_s28 = smov 8  }
  0x1b   :  { %v2600_v25 = vpop.eup %2599  ;;  %s3436_s0 = smov 40   ;;  %s3439_s30 = smov 16  }
  0x1c   :  { %v174_v26 = vmul.f32 32.0, %v2600_v25  ;;  %vm178_vm5 = vweird.f32 %v2600_v25  ;;  %s3438_s20 = smov 24   ;;  %s3465_s21 = smov 24  }
  0x1e   :  { %150 = vmatpush.bf16.msra.mxu0 %v2469_v7  ;;  %v175_v27 = vsub.f32 1.0, %v174_v26 }
  0x20   :  { %v176_v28 = vmul.f32 %v2600_v25, %v175_v27  ;;  %v2580_v27 = vld [vmem:[%s3455_s29] ss:$0 sm:$0xff] }
  0x22   :  { %151 = vmatpush.bf16.msra.mxu0 %v2468_v8  ;;  %v177_v29 = vadd.f32 %v2600_v25, %v176_v28 }
  0x24   :  { %v2908_v30 = vsel %vm178_vm5, %v2600_v25, %v177_v29  ;;  %vm846_vm5 = vcmask 195584  }
  0x26   :  { %152 = vmatpush.bf16.msra.mxu0 %v2467_v12 }
  0x2a   :  { %153 = vmatpush.bf16.msra.mxu0 %v2466_v13 }
  0x7f   :  { %v70_v14 = vpop.permute.xlu0 %69 }
  0x80   :  { %vm74_vm1 = vcmp.eq.s32.totalorder %v2883_v10, %v70_v14 }
  0x87   :  { %v73_v15 = vpop.permute.xlu0 %72 }
  0x88   :  { %vm75_vm2 = vcmp.eq.s32.totalorder %v2883_v10, %v73_v15 }
  0x89   :  { %vm2253_vm3 = vmpackc.low %vm75_vm2, %vm74_vm1 }
  0x8a   :  { %2254 = vmatmul.msk.bf16.vlgmr.msra.gmra.mxu0 %vm2253_vm3, %v2740_v16  ;;  %vm301_vm3 = vcmask 64512  }
 0x107   :  { %v155_v18 = vpop.f32.mrf.mxu0 }
 0x108   :  { %v2900_v19 = vadd.f32 %v155_v18, %v97_v17 }
 0x10a   :  { %v167_v20 = vsel %vm166_vm4, %v2900_v19, 0.0 }
 0x10b   :  { %168 = vadd.xlane.f32.xlu1 %v167_v20 }
 0x10f   :  { %v157_v21 = vpop.f32.mrf.mxu0 }
 0x110   :  { %v2904_v22 = vadd.f32 %v157_v21, %v97_v17 }
 0x112   :  { %v170_v23 = vsel %vm166_vm4, %v2904_v22, 0.0 }
 0x113   :  { %171 = vadd.xlane.f32.xlu1 %v170_v23 }
 0x17e   :  { %v169_v31 = vpop.xlane.xlu1 %168 }
 0x17f   :  { %v180_v32 = vmul.f32 %v2908_v30, %v169_v31 }
 0x181   :  { %v2912_v33 = vsub.f32 %v2900_v19, %v180_v32 }
 0x183   :  { %v184_v34 = vmul.f32 %v2912_v33, %v2912_v33 }
 0x185   :  { %v186_v35 = vsel %vm166_vm4, %v184_v34, 0.0 }
 0x186   :  { %187 = vadd.xlane.f32.xlu2 %v186_v35  ;;  %v172_v36 = vpop.xlane.xlu1 %171  ;;  %v2581_v35 = vld [vmem:[%s3414_s4] ss:$0 sm:$0xff] }
 0x187   :  { %v181_v37 = vmul.f32 %v2908_v30, %v172_v36 }
 0x189   :  { %v2919_v38 = vsub.f32 %v2904_v22, %v181_v37 }
 0x18b   :  { %v185_v39 = vmul.f32 %v2919_v38, %v2919_v38 }
 0x18d   :  { %v189_v40 = vsel %vm166_vm4, %v185_v39, 0.0 }
 0x18e   :  { %190 = vadd.xlane.f32.xlu2 %v189_v40  ;;  %v2582_v40 = vld [vmem:[%s3416_s6] ss:$0 sm:$0xff] }
 0x1f9   :  { %v188_v42 = vpop.xlane.xlu2 %187 }
 0x1fa   :  { %v192_v44 = vmul.f32 %v188_v42, %v2908_v30 }
 0x1fc   :  { %v194_v45 = vadd.f32 1e-05, %v192_v44 }
 0x1fe   :  { %2601 = vrsqrt.f32 %v194_v45  ;;  %vm203_vm6 = vcmp.eq.f32.partialorder %v194_v45, inf  ;;  %v206_v59 = vand.u32 2147483648, %v194_v45  ;;  %vm205_vm7 = vcmp.eq.f32.partialorder %v194_v45, 0.0 }
 0x201   :  { %v191_v46 = vpop.xlane.xlu2 %190 }
 0x202   :  { %v193_v47 = vmul.f32 %v191_v46, %v2908_v30  ;;  %v2746_v46 = vmov 0.0  }
 0x204   :  { %v2602_v48 = vpop.eup %2601  ;;  %v195_v49 = vadd.f32 1e-05, %v193_v47  ;;  %v2969_v47 = vsel %vm162_vm0, -1e+30, %v2746_v46  ;;  %vm843_vm0 = vcmask 130048  }
 0x205   :  { %v197_v50 = vmul.f32 %v2602_v48, %v194_v45 }
 0x206   :  { %2603 = vrsqrt.f32 %v195_v49  ;;  %vm215_vm8 = vcmp.eq.f32.partialorder %v195_v49, inf  ;;  %v218_v2 = vand.u32 2147483648, %v195_v49  ;;  %vm217_vm9 = vcmp.eq.f32.partialorder %v195_v49, 0.0 }
 0x207   :  { %v198_v51 = vmul.f32 %v2602_v48, %v197_v50 }
 0x209   :  { %v199_v52 = vmul.f32 0.5, %v198_v51 }
 0x20b   :  { %v200_v53 = vsub.f32 1.5, %v199_v52 }
 0x20c   :  { %v2604_v54 = vpop.eup %2603 }
 0x20d   :  { %v201_v55 = vmul.f32 %v2602_v48, %v200_v53  ;;  %v209_v56 = vmul.f32 %v2604_v54, %v195_v49 }
 0x20f   :  { %v202_v57 = vmul.f32 %v201_v55, %v194_v45  ;;  %v210_v58 = vmul.f32 %v2604_v54, %v209_v56 }
 0x211   :  { %v211_v60 = vmul.f32 0.5, %v210_v58  ;;  %v204_v61 = vsel %vm203_vm6, %v194_v45, %v202_v57 }
 0x212   :  { %v207_v62 = vsel %vm205_vm7, %v206_v59, %v204_v61 }
 0x213   :  { %v212_v63 = vsub.f32 1.5, %v211_v60  ;;  %2605 = vrcp.f32 %v207_v62  ;;  %v231_v9 = vand.u32 2147483648, %v207_v62  ;;  %vm225_vm11 = vweird.f32 %v207_v62 }
 0x214   :  { %v229_v13 = vand.u32 2147483647, %v207_v62 }
 0x215   :  { %v213_v0 = vmul.f32 %v2604_v54, %v212_v63  ;;  %v232_v17 = vor.u32 1.1754944e-38, %v231_v9 }
 0x216   :  { %vm230_vm13 = vcmp.eq.f32.partialorder %v229_v13, 8.507059e+37 }
 0x217   :  { %v214_v1 = vmul.f32 %v213_v0, %v195_v49 }
 0x219   :  { %v2606_v3 = vpop.eup %2605  ;;  %v216_v4 = vsel %vm215_vm8, %v195_v49, %v214_v1 }
 0x21a   :  { %v219_v5 = vsel %vm217_vm9, %v218_v2, %v216_v4  ;;  %v221_v6 = vmul.f32 %v2606_v3, %v207_v62  ;;  %vm226_vm10 = vweird.f32 %v2606_v3 }
 0x21b   :  { %2607 = vrcp.f32 %v219_v5  ;;  %vm227_vm12 = vmor %vm225_vm11, %vm226_vm10  ;;  %v246_v21 = vand.u32 2147483648, %v219_v5  ;;  %v244_v24 = vand.u32 2147483647, %v219_v5  ;;  %vm240_vm15 = vweird.f32 %v219_v5 }
 0x21c   :  { %v222_v7 = vsub.f32 1.0, %v221_v6 }
 0x21d   :  { %v247_v28 = vor.u32 1.1754944e-38, %v246_v21  ;;  %vm245_vm2 = vcmp.eq.f32.partialorder %v244_v24, 8.507059e+37 }
 0x21e   :  { %v223_v8 = vmul.f32 %v2606_v3, %v222_v7 }
 0x220   :  { %v224_v12 = vadd.f32 %v2606_v3, %v223_v8 }
 0x221   :  { %v2608_v14 = vpop.eup %2607 }
 0x222   :  { %v228_v15 = vsel %vm227_vm12, %v2606_v3, %v224_v12  ;;  %v236_v16 = vmul.f32 %v2608_v14, %v219_v5  ;;  %vm241_vm14 = vweird.f32 %v2608_v14 }
 0x223   :  { %v233_v20 = vsel %vm230_vm13, %v232_v17, %v228_v15  ;;  %vm242_vm1 = vmor %vm240_vm15, %vm241_vm14 }
 0x224   :  { %v237_v18 = vsub.f32 1.0, %v236_v16  ;;  %v234_v25 = vmul.f32 %v233_v20, %v2912_v33 }
 0x226   :  { %v238_v23 = vmul.f32 %v2608_v14, %v237_v18  ;;  %v253_v34 = vmul.f32 %v2580_v27, %v234_v25 }
 0x228   :  { %v239_v26 = vadd.f32 %v2608_v14, %v238_v23  ;;  %v258_v33 = vadd.f32 %v2581_v35, %v253_v34 }
 0x22a   :  { %v243_v29 = vsel %vm242_vm1, %v2608_v14, %v239_v26 }
 0x22b   :  { %v248_v31 = vsel %vm245_vm2, %v247_v28, %v243_v29 }
 0x22c   :  { %v249_v32 = vmul.f32 %v248_v31, %v2919_v38 }
 0x22e   :  { %v254_v36 = vmul.f32 %v2580_v27, %v249_v32 }
 0x230   :  { %v259_v37 = vadd.f32 %v2581_v35, %v254_v36 }
 0x232   :  { %v260_v39 = vpack.c.bf16 %v259_v37, %v258_v33 }
 0x234   :  { %2263 = vmatmul.msk.bf16.vlgmr.msra.gmra.mxu1 %vm166_vm4, %v260_v39 }
 0x2b1   :  { %v293_v41 = vpop.f32.mrf.mxu1 }
 0x2b2   :  { %v2944_v42 = vadd.f32 %v2582_v40, %v293_v41 }
 0x2b4   :  { %299 = vrot.lane.b32.xlu0 %v2944_v42, %s2742_s1 }
 0x2b9   :  { %v295_v38 = vpop.f32.mrf.mxu1 }
 0x2ba   :  { %v2948_v43 = vadd.f32 %v2582_v40, %v295_v38 }
 0x2bc   :  { %327 = vrot.lane.b32.xlu1 %v2948_v43, %s2742_s1  ;;  %v2977_v54 = vpack.i.bf16 %v2948_v43, %v2944_v42 }
 0x2c4   :  { %429 = vrot.lane.b32.xlu1 %v2944_v42, %s2743_s22 }
 0x2cc   :  { %457 = vrot.lane.b32.xlu1 %v2948_v43, %s2743_s22 }
 0x2d4   :  { %427 = vrot.lane.b32.xlu1 %v2944_v42, %s2744_s2 }
 0x2dc   :  { %559 = vrot.lane.b32.xlu1 %v2944_v42, %s2745_s23 }
 0x326   :  { %v300_v44 = vpop.permute.xlu0 %299 }
 0x327   :  { %2264 = vmatpush.xpose.msk.msra.mxu2 %vm301_vm3, %v300_v44 }
 0x32a   :  { %2265 = vmatmul.msk.f32.vlgmr.msra.gmra.mxu2 %vm301_vm3, %v2944_v42 }
 0x32e   :  { %v328_v45 = vpop.permute.xlu1 %327 }
 0x32f   :  { %2266 = vmatpush.xpose.msk.msra.mxu3 %vm301_vm3, %v328_v45 }
 0x332   :  { %2267 = vmatmul.msk.f32.vlgmr.msra.gmra.mxu3 %vm301_vm3, %v2948_v43 }
 0x336   :  { %v430_v11 = vpop.permute.xlu1 %429 }
 0x33e   :  { %v458_v63 = vpop.permute.xlu1 %457 }
 0x346   :  { %v428_v6 = vpop.permute.xlu1 %427 }
 0x34e   :  { %v560_v13 = vpop.permute.xlu1 %559 }
 0x3ad   :  { %v323_v48 = vpop.f32.mrf.mxu2 }
 0x3ae   :  { %v324_v49 = vadd.f32 %v323_v48, %v2969_v47 }
 0x3b0   :  { %v353_v50 = vsel %vm301_vm3, %v324_v49, -inf }
 0x3b1   :  { %354 = vmax.xlane.f32.xlu2 %v353_v50 }
 0x3b5   :  { %v350_v51 = vpop.f32.mrf.mxu3 }
 0x3b6   :  { %v351_v52 = vadd.f32 %v350_v51, %v2969_v47 }
 0x3b8   :  { %v356_v53 = vsel %vm301_vm3, %v351_v52, -inf }
 0x3b9   :  { %357 = vmax.xlane.f32.xlu0 %v356_v53 }
 0x3c9   :  { %2526 = vrot.lane.b32.xlu2 %v2977_v54, %s3446_s24 }
 0x3cd   :  { %557 = vrot.lane.b32.xlu0 %v2944_v42, %s3444_s14 }
 0x424   :  { %v355_v10 = vpop.xlane.xlu2 %354 }
 0x425   :  { %v359_v55 = vsub.f32 %v324_v49, %v355_v10 }
 0x427   :  { %v361_v56 = vmul.f32 1.442695, %v359_v55 }
 0x429   :  { %2609 = vpow2.f32 %v361_v56 }
 0x42c   :  { %v2527_v57 = vpop.permute.xlu2 %2526  ;;  %v358_v58 = vpop.xlane.xlu0 %357 }
 0x42d   :  { %v360_v59 = vsub.f32 %v351_v52, %v358_v58  ;;  %v2528_v60 = vunpack.i.l.bf16 %v2527_v57  ;;  %v2529_v61 = vunpack.i.h.bf16 %v2527_v57 }
 0x42f   :  { %v2610_v62 = vpop.eup %2609  ;;  %v363_v0 = vmul.f32 1.442695, %v360_v59  ;;  %396 = vmatpush.msrb.mxu2 %v2528_v60  ;;  %422 = vmatpush.msrb.mxu3 %v2529_v61 }
 0x430   :  { %v365_v1 = vsel %vm301_vm3, %v2610_v62, 0.0 }
 0x431   :  { %2270 = vmatpush.xpose.msk.msra.mxu2 %vm301_vm3, %v430_v11  ;;  %2272 = vmatpush.xpose.msk.msra.mxu3 %vm301_vm3, %v458_v63  ;;  %2611 = vpow2.f32 %v363_v0 }
 0x432   :  { %366 = vadd.xlane.f32.xlu2 %v365_v1 }
 0x437   :  { %v2612_v2 = vpop.eup %2611 }
 0x438   :  { %v368_v3 = vsel %vm301_vm3, %v2612_v2, 0.0 }
 0x43a   :  { %369 = vadd.xlane.f32.xlu2 %v368_v3 }
 0x43f   :  { %v558_v15 = vpop.permute.xlu0 %557 }
 0x452   :  { %455 = vrot.lane.b32.xlu2 %v2948_v43, %s2744_s2 }
 0x4a5   :  { %v367_v4 = vpop.xlane.xlu2 %366 }
 0x4a6   :  { %2613 = vrcp.f32 %v367_v4 }
 0x4ac   :  { %v2614_v5 = vpop.eup %2613 }
 0x4ad   :  { %v370_v7 = vpop.xlane.xlu2 %369  ;;  %v373_v8 = vmul.f32 %v2614_v5, %v2610_v62 }
 0x4ae   :  { %2615 = vrcp.f32 %v370_v7 }
 0x4af   :  { %2268 = vmatmul.msk.f32.vlgmr.msrb.gmra.mxu2 %vm301_vm3, %v373_v8 }
 0x4b4   :  { %v2616_v9 = vpop.eup %2615 }
 0x4b5   :  { %v374_v12 = vmul.f32 %v2616_v9, %v2612_v2  ;;  %v456_v14 = vpop.permute.xlu2 %455 }
 0x4b7   :  { %2269 = vmatmul.msk.f32.vlgmr.msrb.gmra.mxu3 %vm301_vm3, %v374_v12  ;;  %2271 = vmatmul.msk.f32.vlgmr.msra.gmra.mxu2 %vm301_vm3, %v428_v6 }
 0x4b8   :  { %2276 = vmatpush.xpose.msk.msrb.mxu3 %vm301_vm3, %v560_v13 }
 0x4bf   :  { %2273 = vmatmul.msk.f32.vlgmr.msra.gmra.mxu3 %vm301_vm3, %v456_v14 }
 0x4c7   :  { %2277 = vmatmul.msk.f32.vlgmr.msrb.gmra.mxu3 %vm301_vm3, %v558_v15 }
 0x532   :  { %v2995_v16 = vpop.f32.mrf.mxu2 }
 0x53a   :  { %v2997_v17 = vpop.f32.mrf.mxu3  ;;  %v452_v18 = vpop.f32.mrf.mxu2 }
 0x53b   :  { %v453_v20 = vadd.f32 %v452_v18, %v2969_v47 }
 0x53d   :  { %v483_v21 = vsel %vm301_vm3, %v453_v20, -inf }
 0x53e   :  { %484 = vmax.xlane.f32.xlu2 %v483_v21 }
 0x542   :  { %v480_v23 = vpop.f32.mrf.mxu3 }
 0x543   :  { %v481_v24 = vadd.f32 %v480_v23, %v2969_v47 }
 0x545   :  { %v486_v25 = vsel %vm301_vm3, %v481_v24, -inf }
 0x546   :  { %487 = vmax.xlane.f32.xlu1 %v486_v25 }
 0x54a   :  { %v582_v26 = vpop.f32.mrf.mxu3 }
 0x54b   :  { %v583_v27 = vadd.f32 %v582_v26, %v2969_v47 }
 0x54d   :  { %v613_v28 = vsel %vm301_vm3, %v583_v27, -inf }
 0x54e   :  { %614 = vmax.xlane.f32.xlu0 %v613_v28 }
 0x556   :  { %635 = vrot.lane.b32.xlu2 %v2944_v42, %s3437_s25 }
 0x55f   :  { %2531 = vrot.lane.b32.xlu1 %v2977_v54, %s2750_s3 }
 0x562   :  { %587 = vrot.lane.b32.xlu0 %v2948_v43, %s2745_s23 }
 0x567   :  { %689 = vrot.lane.b32.xlu1 %v2944_v42, %s3442_s26 }
 0x56a   :  { %585 = vrot.lane.b32.xlu0 %v2948_v43, %s3444_s14  ;;  %s3464_s14 = smov 16  }
 0x572   :  { %687 = vrot.lane.b32.xlu0 %v2944_v42, %s3440_s27 }
 0x5b1   :  { %v485_v29 = vpop.xlane.xlu2 %484 }
 0x5b2   :  { %v489_v31 = vsub.f32 %v453_v20, %v485_v29 }
 0x5b4   :  { %v491_v32 = vmul.f32 1.442695, %v489_v31 }
 0x5b6   :  { %2617 = vpow2.f32 %v491_v32 }
 0x5b9   :  { %v488_v34 = vpop.xlane.xlu1 %487  ;;  %v636_v51 = vpop.permute.xlu2 %635 }
 0x5ba   :  { %v490_v35 = vsub.f32 %v481_v24, %v488_v34 }
 0x5bc   :  { %v2618_v36 = vpop.eup %2617  ;;  %v493_v33 = vmul.f32 1.442695, %v490_v35 }
 0x5bd   :  { %v495_v37 = vsel %vm301_vm3, %v2618_v36, 0.0 }
 0x5be   :  { %2619 = vpow2.f32 %v493_v33  ;;  %496 = vadd.xlane.f32.xlu2 %v495_v37 }
 0x5c1   :  { %v615_v39 = vpop.xlane.xlu0 %614 }
 0x5c2   :  { %v619_v40 = vsub.f32 %v583_v27, %v615_v39 }
 0x5c4   :  { %v2620_v41 = vpop.eup %2619  ;;  %v621_v38 = vmul.f32 1.442695, %v619_v40 }
 0x5c5   :  { %v498_v44 = vsel %vm301_vm3, %v2620_v41, 0.0 }
 0x5c6   :  { %2621 = vpow2.f32 %v621_v38  ;;  %499 = vadd.xlane.f32.xlu1 %v498_v44 }
 0x5cc   :  { %v2622_v45 = vpop.eup %2621 }
 0x5cd   :  { %v625_v46 = vsel %vm301_vm3, %v2622_v45, 0.0 }
 0x5ce   :  { %626 = vadd.xlane.f32.xlu2 %v625_v46 }
 0x5d1   :  { %v2532_v48 = vpop.permute.xlu1 %2531 }
 0x5d2   :  { %v2534_v49 = vunpack.i.h.bf16 %v2532_v48  ;;  %v2533_v50 = vunpack.i.l.bf16 %v2532_v48 }
 0x5d4   :  { %526 = vmatpush.msrb.mxu1 %v2533_v50  ;;  %552 = vmatpush.msrb.mxu2 %v2534_v49  ;;  %v588_v52 = vpop.permute.xlu0 %587 }
 0x5d6   :  { %2278 = vmatpush.xpose.msk.msra.mxu1 %vm301_vm3, %v588_v52  ;;  %656 = vmatpush.msra.mxu2 %v636_v51 }
 0x5d9   :  { %v690_v53 = vpop.permute.xlu1 %689 }
 0x5dc   :  { %v586_v57 = vpop.permute.xlu0 %585 }
 0x5df   :  { %715 = vrot.lane.b32.xlu1 %v2948_v43, %s3440_s27 }
 0x5e4   :  { %v688_v63 = vpop.permute.xlu0 %687 }
 0x5e6   :  { %717 = vrot.lane.b32.xlu2 %v2948_v43, %s3442_s26 }
 0x631   :  { %v497_v54 = vpop.xlane.xlu2 %496 }
 0x632   :  { %2623 = vrcp.f32 %v497_v54  ;;  %v2477_v54 = vld [vmem:[%s3417_s7 + $0x8] sm:$0xff] }
 0x638   :  { %v2624_v10 = vpop.eup %2623 }
 0x639   :  { %v500_v11 = vpop.xlane.xlu1 %499  ;;  %v503_v55 = vmul.f32 %v2624_v10, %v2618_v36  ;;  %v2476_v10 = vld [vmem:[%s3417_s7] sm:$0xff] }
 0x63a   :  { %2625 = vrcp.f32 %v500_v11 }
 0x63b   :  { %2274 = vmatmul.msk.f32.vlgmr.msrb.gmra.mxu1 %vm301_vm3, %v503_v55 }
 0x63c   :  { %2282 = vmatpush.xpose.msk.msrb.mxu1 %vm301_vm3, %v690_v53 }
 0x640   :  { %v2626_v56 = vpop.eup %2625 }
 0x641   :  { %v504_v58 = vmul.f32 %v2626_v56, %v2620_v41  ;;  %v627_v59 = vpop.xlane.xlu2 %626 }
 0x642   :  { %2627 = vrcp.f32 %v627_v59 }
 0x643   :  { %2275 = vmatmul.msk.f32.vlgmr.msrb.gmra.mxu2 %vm301_vm3, %v504_v58  ;;  %2279 = vmatmul.msk.f32.vlgmr.msra.gmra.mxu1 %vm301_vm3, %v586_v57 }
 0x648   :  { %v2628_v60 = vpop.eup %2627 }
 0x649   :  { %v633_v61 = vmul.f32 %v2628_v60, %v2622_v45  ;;  %v718_v62 = vpop.permute.xlu2 %717 }
 0x64a   :  { %2284 = vmatpush.xpose.msk.msrb.mxu2 %vm301_vm3, %v718_v62 }
 0x64b   :  { %2280 = vmatmul.msk.f32.vlgmr.msra.gmra.mxu2 %vm301_vm3, %v633_v61  ;;  %2283 = vmatmul.msk.f32.vlgmr.msrb.gmra.mxu1 %vm301_vm3, %v688_v63 }
 0x651   :  { %v716_v0 = vpop.permute.xlu1 %715 }
 0x653   :  { %2285 = vmatmul.msk.f32.vlgmr.msrb.gmra.mxu2 %vm301_vm3, %v716_v0 }
 0x6b8   :  { %v528_v1 = vpop.f32.mrf.mxu1 }
 0x6c0   :  { %v610_v2 = vpop.f32.mrf.mxu1 }
 0x6c1   :  { %v611_v3 = vadd.f32 %v610_v2, %v2969_v47 }
 0x6c3   :  { %v616_v4 = vsel %vm301_vm3, %v611_v3, -inf }
 0x6c4   :  { %617 = vmax.xlane.f32.xlu2 %v616_v4 }
 0x6c6   :  { %v554_v5 = vpop.f32.mrf.mxu2 }
 0x6c7   :  { %v2535_v15 = vpack.i.bf16 %v554_v5, %v528_v1 }
 0x6c8   :  { %v712_v6 = vpop.f32.mrf.mxu1 }
 0x6c9   :  { %v713_v7 = vadd.f32 %v712_v6, %v2969_v47 }
 0x6cb   :  { %v743_v8 = vsel %vm301_vm3, %v713_v7, -inf }
 0x6cc   :  { %744 = vmax.xlane.f32.xlu0 %v743_v8 }
 0x6ce   :  { %v658_v9 = vpop.f32.mrf.mxu2 }
 0x6d6   :  { %v740_v12 = vpop.f32.mrf.mxu2 }
 0x6d7   :  { %v741_v13 = vadd.f32 %v740_v12, %v2969_v47 }
 0x6d9   :  { %v746_v14 = vsel %vm301_vm3, %v741_v13, -inf }
 0x6da   :  { %747 = vmax.xlane.f32.xlu1 %v746_v14 }
 0x6f3   :  { %661 = vrot.lane.b32.xlu1 %v2948_v43, %s3437_s25 }
 0x6fb   :  { %2536 = vrot.lane.b32.xlu1 %v2535_v15, %s3434_s28 }
 0x737   :  { %v618_v18 = vpop.xlane.xlu2 %617 }
 0x738   :  { %v620_v20 = vsub.f32 %v611_v3, %v618_v18 }
 0x73a   :  { %v623_v21 = vmul.f32 1.442695, %v620_v20 }
 0x73c   :  { %2629 = vpow2.f32 %v623_v21 }
 0x73f   :  { %v745_v23 = vpop.xlane.xlu0 %744 }
 0x740   :  { %v749_v24 = vsub.f32 %v713_v7, %v745_v23 }
 0x742   :  { %v2630_v25 = vpop.eup %2629  ;;  %v751_v26 = vmul.f32 1.442695, %v749_v24 }
 0x743   :  { %v628_v27 = vsel %vm301_vm3, %v2630_v25, 0.0 }
 0x744   :  { %2631 = vpow2.f32 %v751_v26  ;;  %629 = vadd.xlane.f32.xlu2 %v628_v27 }
 0x74a   :  { %v2632_v28 = vpop.eup %2631 }
 0x74b   :  { %v755_v29 = vsel %vm301_vm3, %v2632_v28, 0.0 }
 0x74c   :  { %756 = vadd.xlane.f32.xlu0 %v755_v29 }
 0x74d   :  { %v748_v31 = vpop.xlane.xlu1 %747 }
 0x74e   :  { %v750_v32 = vsub.f32 %v741_v13, %v748_v31  ;;  %v2478_v31 = vld [vmem:[%s3421_s11] sm:$0xff] }
 0x750   :  { %v753_v34 = vmul.f32 1.442695, %v750_v32 }
 0x752   :  { %2633 = vpow2.f32 %v753_v34 }
 0x758   :  { %v2634_v35 = vpop.eup %2633 }
 0x759   :  { %v758_v36 = vsel %vm301_vm3, %v2634_v35, 0.0 }
 0x75a   :  { %759 = vadd.xlane.f32.xlu2 %v758_v36 }
 0x760   :  { %765 = vrot.lane.b32.xlu0 %v2944_v42, %s3436_s0 }
 0x765   :  { %v662_v33 = vpop.permute.xlu1 %661 }
 0x766   :  { %682 = vmatpush.msra.mxu3 %v662_v33 }
 0x76d   :  { %v2537_v11 = vpop.permute.xlu1 %2536 }
 0x76e   :  { %v2539_v56 = vunpack.i.h.bf16 %v2537_v11  ;;  %v2538_v57 = vunpack.i.l.bf16 %v2537_v11 }
 0x770   :  { %v842_v61 = vsel %vm301_vm3, %v2997_v17, %v2539_v56  ;;  %v841_v62 = vsel %vm301_vm3, %v2995_v16, %v2538_v57  ;;  %v2583_v17 = vld [vmem:[%s3418_s8] ss:$0 sm:$0xff] }
 0x772   :  { %791 = vrot.lane.b32.xlu2 %v2948_v43, %s3436_s0  ;;  %s3456_s0 = sld [smem:[#allocation9_spill]] }
 0x7b7   :  { %v630_v37 = vpop.xlane.xlu2 %629 }
 0x7b8   :  { %2635 = vrcp.f32 %v630_v37 }
 0x7be   :  { %v2636_v39 = vpop.eup %2635 }
 0x7bf   :  { %v634_v40 = vmul.f32 %v2636_v39, %v2630_v25  ;;  %v757_v41 = vpop.xlane.xlu0 %756 }
 0x7c0   :  { %2637 = vrcp.f32 %v757_v41 }
 0x7c1   :  { %2281 = vmatmul.msk.f32.vlgmr.msra.gmra.mxu3 %vm301_vm3, %v634_v40 }
 0x7c6   :  { %v2638_v44 = vpop.eup %2637 }
 0x7c7   :  { %v763_v45 = vmul.f32 %v2638_v44, %v2632_v28  ;;  %v2479_v28 = vld [vmem:[%s3421_s11 + $0x8] sm:$0xff] }
 0x7c8   :  { %1007 = vmatpush.bf16.msrb.mxu0 %v2479_v28  ;;  %v2483_v28 = vld [vmem:[%s3423_s13 + $0x18] sm:$0xff] }
 0x7cc   :  { %1008 = vmatpush.bf16.msrb.mxu0 %v2478_v31  ;;  %v2481_v31 = vld [vmem:[%s3423_s13 + $0x8] sm:$0xff] }
 0x7cd   :  { %v760_v38 = vpop.xlane.xlu2 %759 }
 0x7ce   :  { %2639 = vrcp.f32 %v760_v38 }
 0x7d2   :  { %v766_v46 = vpop.permute.xlu0 %765 }
 0x7d3   :  { %786 = vmatpush.msrb.mxu3 %v766_v46 }
 0x7d4   :  { %v2640_v42 = vpop.eup %2639  ;;  %2286 = vmatmul.msk.f32.vlgmr.msrb.gmra.mxu3 %vm301_vm3, %v763_v45 }
 0x7d5   :  { %v764_v48 = vmul.f32 %v2640_v42, %v2634_v35  ;;  %v792_v49 = vpop.permute.xlu2 %791 }
 0x7d6   :  { %812 = vmatpush.msra.mxu1 %v792_v49 }
 0x7d7   :  { %2287 = vmatmul.msk.f32.vlgmr.msra.gmra.mxu1 %vm301_vm3, %v764_v48 }
 0x7d8   :  { %879 = vmatpush.bf16.msrb.mxu1 %v2477_v54 }
 0x7dc   :  { %880 = vmatpush.bf16.msrb.mxu1 %v2476_v10 }
 0x844   :  { %v684_v43 = vpop.f32.mrf.mxu3 }
 0x845   :  { %v2540_v50 = vpack.i.bf16 %v684_v43, %v658_v9 }
 0x847   :  { %2541 = vrot.lane.b32.xlu0 %v2540_v50, %s3439_s30 }
 0x854   :  { %v814_v51 = vpop.f32.mrf.mxu1 }
 0x857   :  { %v788_v52 = vpop.f32.mrf.mxu3 }
 0x858   :  { %v2545_v53 = vpack.i.bf16 %v814_v51, %v788_v52 }
 0x85a   :  { %2546 = vrot.lane.b32.xlu1 %v2545_v53, %s3438_s20 }
 0x8b9   :  { %v2542_v55 = vpop.permute.xlu0 %2541 }
 0x8ba   :  { %v2544_v58 = vunpack.i.h.bf16 %v2542_v55  ;;  %v2543_v59 = vunpack.i.l.bf16 %v2542_v55 }
 0x8bc   :  { %v845_v1 = vsel %vm843_vm0, %v842_v61, %v2544_v58  ;;  %v844_v2 = vsel %vm843_vm0, %v841_v62, %v2543_v59 }
 0x8cc   :  { %v2547_v60 = vpop.permute.xlu1 %2546 }
 0x8cd   :  { %v2549_v63 = vunpack.i.h.bf16 %v2547_v60  ;;  %v2548_v0 = vunpack.i.l.bf16 %v2547_v60 }
 0x8cf   :  { %v847_v3 = vsel %vm846_vm5, %v844_v2, %v2548_v0  ;;  %v848_v4 = vsel %vm846_vm5, %v845_v1, %v2549_v63 }
 0x8d0   :  { %v849_v5 = vpack.c.bf16 %v848_v4, %v847_v3 }
 0x8d2   :  { %2296 = vmatmul.msk.bf16.vlgmr.msrb.gmra.mxu1 %vm166_vm4, %v849_v5 }
 0x94f   :  { %v882_v6 = vpop.f32.mrf.mxu1 }
 0x950   :  { %v883_v7 = vadd.f32 %v2583_v17, %v882_v6 }
 0x952   :  { %v3073_v16 = vadd.f32 %v883_v7, %v2900_v19 }
 0x954   :  { %v891_v8 = vsel %vm166_vm4, %v3073_v16, 0.0 }
 0x955   :  { %892 = vadd.xlane.f32.xlu0 %v891_v8  ;;  %v2584_v8 = vld [vmem:[%s3419_s9] ss:$0 sm:$0xff] }
 0x957   :  { %v884_v9 = vpop.f32.mrf.mxu1 }
 0x958   :  { %v885_v12 = vadd.f32 %v2583_v17, %v884_v9 }
 0x95a   :  { %v3078_v13 = vadd.f32 %v885_v12, %v2904_v22 }
 0x95c   :  { %v894_v14 = vsel %vm166_vm4, %v3078_v13, 0.0 }
 0x95d   :  { %895 = vadd.xlane.f32.xlu2 %v894_v14 }
 0x9c8   :  { %v893_v15 = vpop.xlane.xlu0 %892 }
 0x9c9   :  { %v897_v18 = vmul.f32 %v893_v15, %v2908_v30 }
 0x9cb   :  { %v3084_v20 = vsub.f32 %v3073_v16, %v897_v18 }
 0x9cd   :  { %v901_v19 = vmul.f32 %v3084_v20, %v3084_v20 }
 0x9cf   :  { %v903_v21 = vsel %vm166_vm4, %v901_v19, 0.0  ;;  %v2585_v19 = vld [vmem:[%s3420_s10] ss:$0 sm:$0xff] }
 0x9d0   :  { %v896_v23 = vpop.xlane.xlu2 %895  ;;  %904 = vadd.xlane.f32.xlu1 %v903_v21 }
 0x9d1   :  { %v898_v22 = vmul.f32 %v896_v23, %v2908_v30 }
 0x9d3   :  { %v3091_v24 = vsub.f32 %v3078_v13, %v898_v22 }
 0x9d5   :  { %v902_v25 = vmul.f32 %v3091_v24, %v3091_v24 }
 0x9d7   :  { %v906_v26 = vsel %vm166_vm4, %v902_v25, 0.0  ;;  %v2487_v25 = vld [vmem:[%s3423_s13 + $0x38] sm:$0xff] }
 0x9d8   :  { %907 = vadd.xlane.f32.xlu2 %v906_v26  ;;  %1102 = vmatpush.bf16.msra.mxu3 %v2487_v25  ;;  %v2485_v26 = vld [vmem:[%s3423_s13 + $0x28] sm:$0xff] }
 0xa43   :  { %v905_v27 = vpop.xlane.xlu1 %904 }
 0xa44   :  { %v909_v29 = vmul.f32 %v905_v27, %v2908_v30  ;;  %v2484_v27 = vld [vmem:[%s3423_s13 + $0x20] sm:$0xff] }
 0xa46   :  { %v911_v32 = vadd.f32 1e-05, %v909_v29  ;;  %v2482_v29 = vld [vmem:[%s3423_s13 + $0x10] sm:$0xff] }
 0xa48   :  { %2641 = vrsqrt.f32 %v911_v32  ;;  %vm920_vm6 = vcmp.eq.f32.partialorder %v911_v32, inf  ;;  %v923_v48 = vand.u32 2147483648, %v911_v32  ;;  %vm922_vm7 = vcmp.eq.f32.partialorder %v911_v32, 0.0 }
 0xa4b   :  { %v908_v34 = vpop.xlane.xlu2 %907 }
 0xa4c   :  { %v910_v35 = vmul.f32 %v908_v34, %v2908_v30  ;;  %v2586_v34 = vld [vmem:[%s3422_s12] ss:$0 sm:$0xff] }
 0xa4e   :  { %v2642_v36 = vpop.eup %2641  ;;  %v912_v33 = vadd.f32 1e-05, %v910_v35 }
 0xa4f   :  { %v914_v37 = vmul.f32 %v2642_v36, %v911_v32 }
 0xa50   :  { %2643 = vrsqrt.f32 %v912_v33  ;;  %vm932_vm8 = vcmp.eq.f32.partialorder %v912_v33, inf  ;;  %v935_v54 = vand.u32 2147483648, %v912_v33  ;;  %vm934_vm9 = vcmp.eq.f32.partialorder %v912_v33, 0.0 }
 0xa51   :  { %v915_v39 = vmul.f32 %v2642_v36, %v914_v37 }
 0xa53   :  { %v916_v40 = vmul.f32 0.5, %v915_v39 }
 0xa55   :  { %v917_v41 = vsub.f32 1.5, %v916_v40 }
 0xa56   :  { %v2644_v38 = vpop.eup %2643 }
 0xa57   :  { %v918_v44 = vmul.f32 %v2642_v36, %v917_v41  ;;  %v926_v45 = vmul.f32 %v2644_v38, %v912_v33 }
 0xa59   :  { %v919_v46 = vmul.f32 %v918_v44, %v911_v32  ;;  %v927_v42 = vmul.f32 %v2644_v38, %v926_v45 }
 0xa5b   :  { %v921_v49 = vsel %vm920_vm6, %v911_v32, %v919_v46  ;;  %v928_v43 = vmul.f32 0.5, %v927_v42  ;;  %v2480_v32 = vld [vmem:[%s3423_s13] sm:$0xff] }
 0xa5c   :  { %v924_v50 = vsel %vm922_vm7, %v923_v48, %v921_v49 }
 0xa5d   :  { %v929_v51 = vsub.f32 1.5, %v928_v43  ;;  %2645 = vrcp.f32 %v924_v50  ;;  %v948_v59 = vand.u32 2147483648, %v924_v50  ;;  %vm942_vm11 = vweird.f32 %v924_v50 }
 0xa5e   :  { %v946_v61 = vand.u32 2147483647, %v924_v50 }
 0xa5f   :  { %v930_v52 = vmul.f32 %v2644_v38, %v929_v51  ;;  %v949_v1 = vor.u32 1.1754944e-38, %v948_v59 }
 0xa60   :  { %vm947_vm13 = vcmp.eq.f32.partialorder %v946_v61, 8.507059e+37 }
 0xa61   :  { %v931_v53 = vmul.f32 %v930_v52, %v912_v33 }
 0xa63   :  { %v2646_v10 = vpop.eup %2645  ;;  %v933_v11 = vsel %vm932_vm8, %v912_v33, %v931_v53 }
 0xa64   :  { %v936_v55 = vsel %vm934_vm9, %v935_v54, %v933_v11  ;;  %v938_v56 = vmul.f32 %v2646_v10, %v924_v50  ;;  %vm943_vm10 = vweird.f32 %v2646_v10 }
 0xa65   :  { %2647 = vrcp.f32 %v936_v55  ;;  %vm944_vm12 = vmor %vm942_vm11, %vm943_vm10  ;;  %v963_v4 = vand.u32 2147483648, %v936_v55  ;;  %v961_v17 = vand.u32 2147483647, %v936_v55  ;;  %vm957_vm15 = vweird.f32 %v936_v55 }
 0xa66   :  { %v939_v57 = vsub.f32 1.0, %v938_v56  ;;  %v2587_v56 = vld [vmem:[%s3456_s0] ss:$0 sm:$0xff] }
 0xa67   :  { %v964_v9 = vor.u32 1.1754944e-38, %v963_v4  ;;  %vm962_vm2 = vcmp.eq.f32.partialorder %v961_v17, 8.507059e+37 }
 0xa68   :  { %v940_v58 = vmul.f32 %v2646_v10, %v939_v57 }
 0xa6a   :  { %v941_v60 = vadd.f32 %v2646_v10, %v940_v58 }
 0xa6b   :  { %v2648_v62 = vpop.eup %2647 }
 0xa6c   :  { %v945_v63 = vsel %vm944_vm12, %v2646_v10, %v941_v60  ;;  %v953_v0 = vmul.f32 %v2648_v62, %v936_v55  ;;  %vm958_vm14 = vweird.f32 %v2648_v62 }
 0xa6d   :  { %v950_v3 = vsel %vm947_vm13, %v949_v1, %v945_v63  ;;  %vm959_vm1 = vmor %vm957_vm15, %vm958_vm14 }
 0xa6e   :  { %v954_v2 = vsub.f32 1.0, %v953_v0  ;;  %v951_v6 = vmul.f32 %v950_v3, %v3084_v20 }
 0xa70   :  { %v955_v5 = vmul.f32 %v2648_v62, %v954_v2  ;;  %v970_v18 = vmul.f32 %v2584_v8, %v951_v6 }
 0xa72   :  { %v956_v7 = vadd.f32 %v2648_v62, %v955_v5  ;;  %v975_v20 = vadd.f32 %v2585_v19, %v970_v18 }
 0xa74   :  { %v960_v12 = vsel %vm959_vm1, %v2648_v62, %v956_v7 }
 0xa75   :  { %v965_v14 = vsel %vm962_vm2, %v964_v9, %v960_v12  ;;  %v2489_v12 = vld [vmem:[%s3415_s5 + $0x18] sm:$0xff] }
 0xa76   :  { %v966_v15 = vmul.f32 %v965_v14, %v3091_v24  ;;  %v2486_v24 = vld [vmem:[%s3423_s13 + $0x30] sm:$0xff]  ;;  %1240 = vmatpush.bf16.msra.mxu0 %v2489_v12 }
 0xa77   :  { %1103 = vmatpush.bf16.msra.mxu3 %v2486_v24 }
 0xa78   :  { %v971_v21 = vmul.f32 %v2584_v8, %v966_v15  ;;  %v2488_v15 = vld [vmem:[%s3415_s5 + $0x10] sm:$0xff] }
 0xa7a   :  { %v976_v23 = vadd.f32 %v2585_v19, %v971_v21  ;;  %1241 = vmatpush.bf16.msra.mxu0 %v2488_v15 }
 0xa7b   :  { %1104 = vmatpush.bf16.msra.mxu3 %v2485_v26 }
 0xa7c   :  { %v977_v22 = vpack.c.bf16 %v976_v23, %v975_v20 }
 0xa7e   :  { %2305 = vmatmul.msk.bf16.vlgmr.msrb.gmra.mxu0 %vm166_vm4, %v977_v22 }
 0xa7f   :  { %1105 = vmatpush.bf16.msra.mxu3 %v2484_v27 }
 0xa83   :  { %1106 = vmatpush.bf16.msra.mxu3 %v2483_v28 }
 0xa87   :  { %1107 = vmatpush.bf16.msra.mxu3 %v2482_v29 }
 0xa8b   :  { %1108 = vmatpush.bf16.msra.mxu3 %v2481_v31 }
 0xa8f   :  { %1109 = vmatpush.bf16.msra.mxu3 %v2480_v32 }
 0xafb   :  { %v1010_v35 = vpop.f32.mrf.mxu0 }
 0xafc   :  { %v1011_v36 = vadd.f32 %v2586_v34, %v1010_v35 }
 0xafe   :  { %v1017_v33 = vmul.f32 0.044715, %v1011_v36  ;;  %v1015_v52 = vmul.f32 0.5, %v1011_v36 }
 0xb00   :  { %v1019_v37 = vmul.f32 %v1017_v33, %v1011_v36 }
 0xb02   :  { %v1021_v39 = vmul.f32 %v1019_v37, %v1011_v36 }
 0xb03   :  { %v1012_v40 = vpop.f32.mrf.mxu0 }
 0xb04   :  { %v1023_v41 = vadd.f32 %v1021_v39, %v1011_v36  ;;  %v1013_v38 = vadd.f32 %v2586_v34, %v1012_v40 }
 0xb06   :  { %v1018_v44 = vmul.f32 0.044715, %v1013_v38  ;;  %v1025_v45 = vmul.f32 0.7978846, %v1023_v41  ;;  %v1016_v53 = vmul.f32 0.5, %v1013_v38 }
 0xb08   :  { %v1020_v46 = vmul.f32 %v1018_v44, %v1013_v38  ;;  %2649 = vtanh.f32 %v1025_v45 }
 0xb0a   :  { %v1022_v42 = vmul.f32 %v1020_v46, %v1013_v38 }
 0xb0c   :  { %v1024_v48 = vadd.f32 %v1022_v42, %v1013_v38 }
 0xb0e   :  { %v1026_v49 = vmul.f32 0.7978846, %v1024_v48  ;;  %v2650_v43 = vpop.eup %2649 }
 0xb0f   :  { %v1029_v50 = vadd.f32 1.0, %v2650_v43 }
 0xb10   :  { %2651 = vtanh.f32 %v1026_v49 }
 0xb11   :  { %v1031_v10 = vmul.f32 %v1029_v50, %v1015_v52 }
 0xb16   :  { %v2652_v51 = vpop.eup %2651 }
 0xb17   :  { %v1030_v54 = vadd.f32 1.0, %v2652_v51 }
 0xb19   :  { %v1032_v11 = vmul.f32 %v1030_v54, %v1016_v53 }
 0xb1b   :  { %v1033_v55 = vpack.c.bf16 %v1032_v11, %v1031_v10 }
 0xb1d   :  { %1110 = vmatmul.bf16.vlgmr.msra.gmra.mxu3 %v1033_v55 }
 0xba0   :  { %v1111_v57 = vpop.f32.mrf.mxu3 }
 0xba1   :  { %v1112_v58 = vadd.f32 %v2587_v56, %v1111_v57 }
 0xba3   :  { %v3144_v59 = vadd.f32 %v1112_v58, %v3073_v16 }
 0xba5   :  { %v1122_v60 = vsel %vm166_vm4, %v3144_v59, 0.0 }
 0xba6   :  { %1123 = vadd.xlane.f32.xlu0 %v1122_v60  ;;  %v2588_v60 = vld [vmem:[%s3455_s29 + $0x1] ss:$0 sm:$0xff] }
 0xba8   :  { %v1113_v61 = vpop.f32.mrf.mxu3 }
 0xba9   :  { %v1114_v62 = vadd.f32 %v2587_v56, %v1113_v61 }
 0xbab   :  { %v3149_v63 = vadd.f32 %v1114_v62, %v3078_v13 }
 0xbad   :  { %v1125_v0 = vsel %vm166_vm4, %v3149_v63, 0.0 }
 0xbae   :  { %1126 = vadd.xlane.f32.xlu1 %v1125_v0 }
 0xc19   :  { %v1124_v1 = vpop.xlane.xlu0 %1123 }
 0xc1a   :  { %v1128_v2 = vmul.f32 %v1124_v1, %v2908_v30 }
 0xc1c   :  { %v3155_v3 = vsub.f32 %v3144_v59, %v1128_v2 }
 0xc1e   :  { %v1132_v16 = vmul.f32 %v3155_v3, %v3155_v3 }
 0xc20   :  { %v1134_v4 = vsel %vm166_vm4, %v1132_v16, 0.0  ;;  %v2589_v16 = vld [vmem:[%s3414_s4 + $0x1] ss:$0 sm:$0xff]  ;;  %s3457_s4 = smov 64  }
 0xc21   :  { %v1127_v5 = vpop.xlane.xlu1 %1126  ;;  %1135 = vadd.xlane.f32.xlu2 %v1134_v4 }
 0xc22   :  { %v1129_v13 = vmul.f32 %v1127_v5, %v2908_v30 }
 0xc24   :  { %v3162_v17 = vsub.f32 %v3149_v63, %v1129_v13 }
 0xc26   :  { %v1133_v6 = vmul.f32 %v3162_v17, %v3162_v17 }
 0xc28   :  { %v1137_v7 = vsel %vm166_vm4, %v1133_v6, 0.0  ;;  %v2590_v6 = vld [vmem:[%s3416_s6 + $0x1] ss:$0 sm:$0xff]  ;;  %s3458_s6 = smov 112  }
 0xc29   :  { %1138 = vadd.xlane.f32.xlu0 %v1137_v7 }
 0xc94   :  { %v1136_v8 = vpop.xlane.xlu2 %1135 }
 0xc95   :  { %v1140_v9 = vmul.f32 %v1136_v8, %v2908_v30 }
 0xc97   :  { %v1142_v14 = vadd.f32 1e-05, %v1140_v9 }
 0xc99   :  { %2653 = vrsqrt.f32 %v1142_v14  ;;  %vm1151_vm6 = vcmp.eq.f32.partialorder %v1142_v14, inf  ;;  %v1154_v32 = vand.u32 2147483648, %v1142_v14  ;;  %vm1153_vm7 = vcmp.eq.f32.partialorder %v1142_v14, 0.0 }
 0xc9c   :  { %v1139_v18 = vpop.xlane.xlu0 %1138 }
 0xc9d   :  { %v1141_v19 = vmul.f32 %v1139_v18, %v2908_v30 }
 0xc9f   :  { %v2654_v21 = vpop.eup %2653  ;;  %v1143_v20 = vadd.f32 1e-05, %v1141_v19 }
 0xca0   :  { %v1145_v23 = vmul.f32 %v2654_v21, %v1142_v14 }
 0xca1   :  { %2655 = vrsqrt.f32 %v1143_v20  ;;  %vm1163_vm8 = vcmp.eq.f32.partialorder %v1143_v20, inf  ;;  %v1166_v40 = vand.u32 2147483648, %v1143_v20  ;;  %vm1165_vm9 = vcmp.eq.f32.partialorder %v1143_v20, 0.0 }
 0xca2   :  { %v1146_v22 = vmul.f32 %v2654_v21, %v1145_v23 }
 0xca4   :  { %v1147_v25 = vmul.f32 0.5, %v1146_v22 }
 0xca6   :  { %v1148_v24 = vsub.f32 1.5, %v1147_v25 }
 0xca7   :  { %v2656_v26 = vpop.eup %2655 }
 0xca8   :  { %v1149_v27 = vmul.f32 %v2654_v21, %v1148_v24  ;;  %v1157_v28 = vmul.f32 %v2656_v26, %v1143_v20 }
 0xcaa   :  { %v1150_v29 = vmul.f32 %v1149_v27, %v1142_v14  ;;  %v1158_v31 = vmul.f32 %v2656_v26, %v1157_v28 }
 0xcac   :  { %v1152_v34 = vsel %vm1151_vm6, %v1142_v14, %v1150_v29  ;;  %v1159_v35 = vmul.f32 0.5, %v1158_v31 }
 0xcad   :  { %v1155_v36 = vsel %vm1153_vm7, %v1154_v32, %v1152_v34 }
 0xcae   :  { %2657 = vrcp.f32 %v1155_v36  ;;  %v1160_v33 = vsub.f32 1.5, %v1159_v35  ;;  %v1179_v48 = vand.u32 2147483648, %v1155_v36  ;;  %vm1173_vm11 = vweird.f32 %v1155_v36 }
 0xcaf   :  { %v1177_v43 = vand.u32 2147483647, %v1155_v36 }
 0xcb0   :  { %v1161_v37 = vmul.f32 %v2656_v26, %v1160_v33  ;;  %v1180_v53 = vor.u32 1.1754944e-38, %v1179_v48 }
 0xcb1   :  { %vm1178_vm13 = vcmp.eq.f32.partialorder %v1177_v43, 8.507059e+37 }
 0xcb2   :  { %v1162_v39 = vmul.f32 %v1161_v37, %v1143_v20 }
 0xcb4   :  { %v2658_v41 = vpop.eup %2657  ;;  %v1164_v38 = vsel %vm1163_vm8, %v1143_v20, %v1162_v39 }
 0xcb5   :  { %v1167_v44 = vsel %vm1165_vm9, %v1166_v40, %v1164_v38  ;;  %v1169_v45 = vmul.f32 %v2658_v41, %v1155_v36  ;;  %vm1174_vm10 = vweird.f32 %v2658_v41 }
 0xcb6   :  { %2659 = vrcp.f32 %v1167_v44  ;;  %vm1175_vm12 = vmor %vm1173_vm11, %vm1174_vm10  ;;  %v1194_v11 = vand.u32 2147483648, %v1167_v44  ;;  %v1192_v56 = vand.u32 2147483647, %v1167_v44  ;;  %vm1188_vm15 = vweird.f32 %v1167_v44 }
 0xcb7   :  { %v1170_v46 = vsub.f32 1.0, %v1169_v45 }
 0xcb8   :  { %v1195_v61 = vor.u32 1.1754944e-38, %v1194_v11  ;;  %vm1193_vm2 = vcmp.eq.f32.partialorder %v1192_v56, 8.507059e+37 }
 0xcb9   :  { %v1171_v42 = vmul.f32 %v2658_v41, %v1170_v46 }
 0xcbb   :  { %v1172_v49 = vadd.f32 %v2658_v41, %v1171_v42 }
 0xcbc   :  { %v2660_v50 = vpop.eup %2659 }
 0xcbd   :  { %v1176_v51 = vsel %vm1175_vm12, %v2658_v41, %v1172_v49  ;;  %v1184_v52 = vmul.f32 %v2660_v50, %v1167_v44  ;;  %vm1189_vm14 = vweird.f32 %v2660_v50 }
 0xcbe   :  { %v1181_v10 = vsel %vm1178_vm13, %v1180_v53, %v1176_v51  ;;  %vm1190_vm1 = vmor %vm1188_vm15, %vm1189_vm14 }
 0xcbf   :  { %v1185_v54 = vsub.f32 1.0, %v1184_v52  ;;  %v1182_v57 = vmul.f32 %v1181_v10, %v3155_v3 }
 0xcc1   :  { %v1186_v55 = vmul.f32 %v2660_v50, %v1185_v54  ;;  %v1201_v2 = vmul.f32 %v2588_v60, %v1182_v57 }
 0xcc3   :  { %v1187_v58 = vadd.f32 %v2660_v50, %v1186_v55  ;;  %v1206_v3 = vadd.f32 %v2589_v16, %v1201_v2 }
 0xcc5   :  { %v1191_v62 = vsel %vm1190_vm1, %v2660_v50, %v1187_v58 }
 0xcc6   :  { %v1196_v0 = vsel %vm1193_vm2, %v1195_v61, %v1191_v62 }
 0xcc7   :  { %v1197_v1 = vmul.f32 %v1196_v0, %v3162_v17 }
 0xcc9   :  { %v1202_v4 = vmul.f32 %v2588_v60, %v1197_v1 }
 0xccb   :  { %v1207_v5 = vadd.f32 %v2589_v16, %v1202_v4 }
 0xccd   :  { %v1208_v13 = vpack.c.bf16 %v1207_v5, %v1206_v3 }
 0xccf   :  { %2353 = vmatmul.msk.bf16.vlgmr.msra.gmra.mxu0 %vm166_vm4, %v1208_v13 }
 0xd4c   :  { %v1243_v7 = vpop.f32.mrf.mxu0 }
 0xd4d   :  { %v1244_v8 = vadd.f32 %v2590_v6, %v1243_v7 }
 0xd4f   :  { %1378 = vrot.lane.b32.xlu0 %v1244_v8, %s2743_s22  ;;  %1249 = vrot.lane.b32.xlu2 %v1244_v8, %s2742_s1 }
 0xd54   :  { %v1245_v17 = vpop.f32.mrf.mxu0 }
 0xd55   :  { %v3189_v9 = vadd.f32 %v2590_v6, %v1245_v17 }
 0xd57   :  { %1276 = vrot.lane.b32.xlu1 %v3189_v9, %s2742_s1  ;;  %1376 = vrot.lane.b32.xlu0 %v1244_v8, %s2744_s2  ;;  %v3201_v12 = vpack.i.bf16 %v3189_v9, %v1244_v8  ;;  %s3459_s1 = smov 72  }
 0xd58   :  { %1406 = vrot.lane.b32.xlu2 %v3189_v9, %s2743_s22  ;;  %s3460_s22 = smov 104  }
 0xd5f   :  { %1508 = vrot.lane.b32.xlu1 %v1244_v8, %s2745_s23  ;;  %1454 = vrot.lane.b32.xlu0 %v1244_v8, %s2750_s3 }
 0xd60   :  { %1404 = vrot.lane.b32.xlu2 %v3189_v9, %s2744_s2  ;;  %s3461_s2 = smov 48  }
 0xd67   :  { %2551 = vrot.lane.b32.xlu1 %v3201_v12, %s3457_s4  ;;  %1536 = vrot.lane.b32.xlu0 %v3189_v9, %s2745_s23  ;;  %s3462_s23 = smov 40  }
 0xda9   :  { %v1250_v14 = vpop.permute.xlu2 %1249 }
 0xdaa   :  { %2354 = vmatpush.xpose.msk.msra.mxu1 %vm301_vm3, %v1250_v14 }
 0xdad   :  { %2355 = vmatmul.msk.f32.vlgmr.msra.gmra.mxu1 %vm301_vm3, %v1244_v8 }
 0xdb2   :  { %v1407_v25 = vpop.permute.xlu2 %1406 }
 0xdba   :  { %v1405_v38 = vpop.permute.xlu2 %1404 }
 0xdc1   :  { %v1379_v15 = vpop.permute.xlu0 %1378 }
 0xdc9   :  { %v1277_v18 = vpop.permute.xlu1 %1276  ;;  %v1377_v21 = vpop.permute.xlu0 %1376 }
 0xdca   :  { %2356 = vmatpush.xpose.msk.msra.mxu2 %vm301_vm3, %v1277_v18 }
 0xdcd   :  { %2357 = vmatmul.msk.f32.vlgmr.msra.gmra.mxu2 %vm301_vm3, %v3189_v9 }
 0xdce   :  { %2360 = vmatpush.xpose.msk.msrb.mxu2 %vm301_vm3, %v1379_v15 }
 0xdd1   :  { %v1509_v19 = vpop.permute.xlu1 %1508  ;;  %v1455_v24 = vpop.permute.xlu0 %1454 }
 0xdd5   :  { %2361 = vmatmul.msk.f32.vlgmr.msrb.gmra.mxu2 %vm301_vm3, %v1377_v21 }
 0xdd9   :  { %v2552_v20 = vpop.permute.xlu1 %2551  ;;  %v1537_v44 = vpop.permute.xlu0 %1536 }
 0xdda   :  { %v2554_v23 = vunpack.i.h.bf16 %v2552_v20  ;;  %v2553_v22 = vunpack.i.l.bf16 %v2552_v20 }
 0xddc   :  { %1345 = vmatpush.msrb.mxu0 %v2553_v22  ;;  %1371 = vmatpush.msrb.mxu1 %v2554_v23 }
 0xdde   :  { %2362 = vmatpush.xpose.msk.msra.mxu0 %vm301_vm3, %v1407_v25  ;;  %1475 = vmatpush.msra.mxu1 %v1455_v24 }
 0xe2a   :  { %v1272_v26 = vpop.f32.mrf.mxu1 }
 0xe2b   :  { %v1273_v27 = vadd.f32 %v1272_v26, %v2969_v47 }
 0xe2d   :  { %v1302_v28 = vsel %vm301_vm3, %v1273_v27, -inf }
 0xe2e   :  { %1303 = vmax.xlane.f32.xlu1 %v1302_v28 }
 0xe47   :  { %1534 = vrot.lane.b32.xlu1 %v3189_v9, %s3458_s6 }
 0xe50   :  { %v1299_v29 = vpop.f32.mrf.mxu2 }
 0xe51   :  { %v1300_v31 = vadd.f32 %v1299_v29, %v2969_v47 }
 0xe53   :  { %v1305_v32 = vsel %vm301_vm3, %v1300_v31, -inf }
 0xe54   :  { %1306 = vmax.xlane.f32.xlu2 %v1305_v32 }
 0xe58   :  { %v1401_v34 = vpop.f32.mrf.mxu2 }
 0xe59   :  { %v1402_v35 = vadd.f32 %v1401_v34, %v2969_v47 }
 0xe5b   :  { %v1432_v36 = vsel %vm301_vm3, %v1402_v35, -inf }
 0xe5c   :  { %1433 = vmax.xlane.f32.xlu0 %v1432_v36 }
 0xe6c   :  { %1506 = vrot.lane.b32.xlu2 %v1244_v8, %s3458_s6 }
 0xe70   :  { %1638 = vrot.lane.b32.xlu0 %v1244_v8, %s3459_s1 }
 0xea1   :  { %v1304_v33 = vpop.xlane.xlu1 %1303 }
 0xea2   :  { %v1308_v37 = vsub.f32 %v1273_v27, %v1304_v33 }
 0xea4   :  { %v1310_v39 = vmul.f32 1.442695, %v1308_v37 }
 0xea6   :  { %2661 = vpow2.f32 %v1310_v39 }
 0xeac   :  { %v2662_v40 = vpop.eup %2661 }
 0xead   :  { %v1314_v41 = vsel %vm301_vm3, %v2662_v40, 0.0 }
 0xeae   :  { %1315 = vadd.xlane.f32.xlu1 %v1314_v41 }
 0xeb9   :  { %v1535_v54 = vpop.permute.xlu1 %1534 }
 0xec7   :  { %1636 = vrot.lane.b32.xlu1 %v1244_v8, %s3460_s22  ;;  %v1307_v45 = vpop.xlane.xlu2 %1306 }
 0xec8   :  { %v1309_v46 = vsub.f32 %v1300_v31, %v1307_v45 }
 0xeca   :  { %v1312_v42 = vmul.f32 1.442695, %v1309_v46 }
 0xecc   :  { %2663 = vpow2.f32 %v1312_v42 }
 0xecf   :  { %v1434_v48 = vpop.xlane.xlu0 %1433  ;;  %v1507_v57 = vpop.permute.xlu2 %1506 }
 0xed0   :  { %v1438_v49 = vsub.f32 %v1402_v35, %v1434_v48 }
 0xed2   :  { %v2664_v43 = vpop.eup %2663  ;;  %v1440_v50 = vmul.f32 1.442695, %v1438_v49 }
 0xed3   :  { %v1317_v51 = vsel %vm301_vm3, %v2664_v43, 0.0 }
 0xed4   :  { %2665 = vpow2.f32 %v1440_v50  ;;  %1318 = vadd.xlane.f32.xlu2 %v1317_v51 }
 0xeda   :  { %v2666_v52 = vpop.eup %2665 }
 0xedb   :  { %v1444_v53 = vsel %vm301_vm3, %v2666_v52, 0.0 }
 0xedc   :  { %1445 = vadd.xlane.f32.xlu0 %v1444_v53 }
 0xee2   :  { %v1639_v56 = vpop.permute.xlu0 %1638 }
 0xeec   :  { %1666 = vrot.lane.b32.xlu2 %v3189_v9, %s3459_s1 }
 0xef0   :  { %1664 = vrot.lane.b32.xlu0 %v3189_v9, %s3460_s22 }
 0xf21   :  { %v1316_v10 = vpop.xlane.xlu1 %1315 }
 0xf22   :  { %2667 = vrcp.f32 %v1316_v10 }
 0xf28   :  { %v2668_v11 = vpop.eup %2667 }
 0xf29   :  { %v1322_v55 = vmul.f32 %v2668_v11, %v2662_v40 }
 0xf2b   :  { %2358 = vmatmul.msk.f32.vlgmr.msrb.gmra.mxu0 %vm301_vm3, %v1322_v55 }
 0xf2c   :  { %2366 = vmatpush.xpose.msk.msrb.mxu0 %vm301_vm3, %v1509_v19 }
 0xf33   :  { %2363 = vmatmul.msk.f32.vlgmr.msra.gmra.mxu0 %vm301_vm3, %v1405_v38 }
 0xf34   :  { %2372 = vmatpush.xpose.msk.msra.mxu0 %vm301_vm3, %v1639_v56 }
 0xf39   :  { %v1637_v58 = vpop.permute.xlu1 %1636 }
 0xf3b   :  { %2367 = vmatmul.msk.f32.vlgmr.msrb.gmra.mxu0 %vm301_vm3, %v1507_v57 }
 0xf43   :  { %2373 = vmatmul.msk.f32.vlgmr.msra.gmra.mxu0 %vm301_vm3, %v1637_v58 }
 0xf47   :  { %v1319_v60 = vpop.xlane.xlu2 %1318 }
 0xf48   :  { %2669 = vrcp.f32 %v1319_v60 }
 0xf4e   :  { %v2670_v61 = vpop.eup %2669 }
 0xf4f   :  { %v1323_v62 = vmul.f32 %v2670_v61, %v2664_v43  ;;  %v1446_v0 = vpop.xlane.xlu0 %1445  ;;  %v1667_v16 = vpop.permute.xlu2 %1666 }
 0xf50   :  { %2671 = vrcp.f32 %v1446_v0 }
 0xf51   :  { %2359 = vmatmul.msk.f32.vlgmr.msrb.gmra.mxu1 %vm301_vm3, %v1323_v62 }
 0xf52   :  { %2368 = vmatpush.xpose.msk.msrb.mxu1 %vm301_vm3, %v1537_v44 }
 0xf56   :  { %v2672_v1 = vpop.eup %2671 }
 0xf57   :  { %v1452_v2 = vmul.f32 %v2672_v1, %v2666_v52 }
 0xf59   :  { %2364 = vmatmul.msk.f32.vlgmr.msra.gmra.mxu1 %vm301_vm3, %v1452_v2 }
 0xf5a   :  { %2374 = vmatpush.xpose.msk.msra.mxu1 %vm301_vm3, %v1667_v16 }
 0xf61   :  { %2369 = vmatmul.msk.f32.vlgmr.msrb.gmra.mxu1 %vm301_vm3, %v1535_v54 }
 0xf62   :  { %v1665_v4 = vpop.permute.xlu0 %1664 }
 0xf69   :  { %2375 = vmatmul.msk.f32.vlgmr.msra.gmra.mxu1 %vm301_vm3, %v1665_v4 }
 0xfa8   :  { %v3245_v3 = vpop.f32.mrf.mxu0 }
 0xfb0   :  { %v1429_v5 = vpop.f32.mrf.mxu0 }
 0xfb1   :  { %v1430_v13 = vadd.f32 %v1429_v5, %v2969_v47 }
 0xfb3   :  { %v1435_v6 = vsel %vm301_vm3, %v1430_v13, -inf }
 0xfb4   :  { %1436 = vmax.xlane.f32.xlu2 %v1435_v6 }
 0xfb8   :  { %v1531_v7 = vpop.f32.mrf.mxu0 }
 0xfb9   :  { %v1532_v8 = vadd.f32 %v1531_v7, %v2969_v47 }
 0xfbb   :  { %v1562_v17 = vsel %vm301_vm3, %v1532_v8, -inf }
 0xfbc   :  { %1563 = vmax.xlane.f32.xlu1 %v1562_v17 }
 0xfc0   :  { %v1661_v14 = vpop.f32.mrf.mxu0 }
 0xfc1   :  { %v1662_v15 = vadd.f32 %v1661_v14, %v2969_v47 }
 0xfc3   :  { %v1692_v18 = vsel %vm301_vm3, %v1662_v15, -inf }
 0xfc4   :  { %1693 = vmax.xlane.f32.xlu2 %v1692_v18 }
 0xfce   :  { %v3253_v19 = vpop.f32.mrf.mxu1 }
 0xfd6   :  { %v3255_v21 = vpop.f32.mrf.mxu1 }
 0xfde   :  { %v1559_v20 = vpop.f32.mrf.mxu1 }
 0xfdf   :  { %v1560_v23 = vadd.f32 %v1559_v20, %v2969_v47 }
 0xfe1   :  { %v1565_v22 = vsel %vm301_vm3, %v1560_v23, -inf }
 0xfe2   :  { %1566 = vmax.xlane.f32.xlu0 %v1565_v22 }
 0xfe6   :  { %v1689_v25 = vpop.f32.mrf.mxu1 }
 0xfe7   :  { %v1690_v24 = vadd.f32 %v1689_v25, %v2969_v47  ;;  %v2491_v25 = vld [vmem:[%s3417_s7 + $0x18] sm:$0xff] }
 0xfe8   :  { %1828 = vmatpush.bf16.msrb.mxu0 %v2491_v25 }
 0xfe9   :  { %v1695_v26 = vsel %vm301_vm3, %v1690_v24, -inf }
 0xfea   :  { %1696 = vmax.xlane.f32.xlu1 %v1695_v26 }
0x1027   :  { %v1437_v27 = vpop.xlane.xlu2 %1436 }
0x1028   :  { %v1439_v28 = vsub.f32 %v1430_v13, %v1437_v27 }
0x102a   :  { %v1442_v29 = vmul.f32 1.442695, %v1439_v28 }
0x102c   :  { %2673 = vpow2.f32 %v1442_v29 }
0x102f   :  { %v1564_v31 = vpop.xlane.xlu1 %1563 }
0x1030   :  { %v1568_v32 = vsub.f32 %v1532_v8, %v1564_v31 }
0x1032   :  { %v2674_v34 = vpop.eup %2673  ;;  %v1570_v35 = vmul.f32 1.442695, %v1568_v32 }
0x1033   :  { %v1447_v36 = vsel %vm301_vm3, %v2674_v34, 0.0 }
0x1034   :  { %2675 = vpow2.f32 %v1570_v35  ;;  %1448 = vadd.xlane.f32.xlu0 %v1447_v36 }
0x1037   :  { %v1694_v33 = vpop.xlane.xlu2 %1693 }
0x1038   :  { %v1698_v37 = vsub.f32 %v1662_v15, %v1694_v33 }
0x103a   :  { %v2676_v39 = vpop.eup %2675  ;;  %v1700_v40 = vmul.f32 1.442695, %v1698_v37 }
0x103b   :  { %v1574_v47 = vsel %vm301_vm3, %v2676_v39, 0.0 }
0x103c   :  { %2677 = vpow2.f32 %v1700_v40  ;;  %1575 = vadd.xlane.f32.xlu2 %v1574_v47 }
0x1042   :  { %v2678_v41 = vpop.eup %2677 }
0x1043   :  { %v1704_v38 = vsel %vm301_vm3, %v2678_v41, 0.0 }
0x1044   :  { %1705 = vadd.xlane.f32.xlu2 %v1704_v38 }
0x1048   :  { %1480 = vrot.lane.b32.xlu0 %v3189_v9, %s2750_s3  ;;  %s3463_s3 = smov 8  }
0x1055   :  { %v1567_v44 = vpop.xlane.xlu0 %1566 }
0x1056   :  { %v1569_v45 = vsub.f32 %v1560_v23, %v1567_v44 }
0x1058   :  { %v1572_v46 = vmul.f32 1.442695, %v1569_v45 }
0x105a   :  { %2679 = vpow2.f32 %v1572_v46 }
0x105c   :  { %2556 = vrot.lane.b32.xlu2 %v3201_v12, %s3461_s2  ;;  %s2757_s2 = smov [#allocation2]  }
0x105d   :  { %v1697_v42 = vpop.xlane.xlu1 %1696 }
0x105e   :  { %v1699_v48 = vsub.f32 %v1690_v24, %v1697_v42 }
0x1060   :  { %v2680_v49 = vpop.eup %2679  ;;  %v1702_v43 = vmul.f32 1.442695, %v1699_v48 }
0x1061   :  { %v1577_v50 = vsel %vm301_vm3, %v2680_v49, 0.0 }
0x1062   :  { %2681 = vpow2.f32 %v1702_v43  ;;  %1578 = vadd.xlane.f32.xlu1 %v1577_v50 }
0x1068   :  { %v2682_v51 = vpop.eup %2681 }
0x1069   :  { %v1707_v52 = vsel %vm301_vm3, %v2682_v51, 0.0 }
0x106a   :  { %1708 = vadd.xlane.f32.xlu1 %v1707_v52 }
0x1083   :  { %2561 = vrot.lane.b32.xlu1 %v3201_v12, %s3462_s23  ;;  %s2205_s23 = sshll.u32 %s2757_s2, 4  ;;  %s2206_s23 = int_to_ptr.vmem [resolvable:$true] %s2205_s23 }
0x10a7   :  { %v1449_v9 = vpop.xlane.xlu0 %1448 }
0x10a8   :  { %2683 = vrcp.f32 %v1449_v9 }
0x10ae   :  { %v2684_v54 = vpop.eup %2683 }
0x10af   :  { %v1576_v53 = vpop.xlane.xlu2 %1575  ;;  %v1453_v11 = vmul.f32 %v2684_v54, %v2674_v34 }
0x10b0   :  { %2685 = vrcp.f32 %v1576_v53 }
0x10b6   :  { %v2686_v56 = vpop.eup %2685 }
0x10b7   :  { %v1706_v10 = vpop.xlane.xlu2 %1705  ;;  %v1582_v61 = vmul.f32 %v2686_v56, %v2676_v39  ;;  %v2493_v56 = vld [vmem:[%s3421_s11 + $0x18] sm:$0xff] }
0x10b8   :  { %1960 = vmatpush.bf16.msrb.mxu1 %v2493_v56  ;;  %v2495_v56 = vld [vmem:[%s3423_s13 + $0x48] sm:$0xff] }
0x10ba   :  { %v1481_v55 = vpop.permute.xlu0 %1480 }
0x10bb   :  { %1501 = vmatpush.msra.mxu2 %v1481_v55 }
0x10bc   :  { %2365 = vmatmul.msk.f32.vlgmr.msra.gmra.mxu2 %vm301_vm3, %v1453_v11 }
0x10bf   :  { %v2557_v57 = vpop.permute.xlu2 %2556 }
0x10c0   :  { %v2559_v58 = vunpack.i.h.bf16 %v2557_v57  ;;  %v2558_v60 = vunpack.i.l.bf16 %v2557_v57 }
0x10c2   :  { %1605 = vmatpush.msrb.mxu2 %v2558_v60  ;;  %1631 = vmatpush.msrb.mxu3 %v2559_v58  ;;  %v2492_v58 = vld [vmem:[%s3421_s11 + $0x10] sm:$0xff] }
0x10c3   :  { %1961 = vmatpush.bf16.msrb.mxu1 %v2492_v58  ;;  %v2594_v58 = vld [vmem:[%s3422_s12 + $0x1] ss:$0 sm:$0xff] }
0x10c4   :  { %2370 = vmatmul.msk.f32.vlgmr.msrb.gmra.mxu2 %vm301_vm3, %v1582_v61 }
0x10d5   :  { %v1579_v12 = vpop.xlane.xlu1 %1578 }
0x10d6   :  { %2687 = vrcp.f32 %v1579_v12 }
0x10d7   :  { %2689 = vrcp.f32 %v1706_v10 }
0x10dc   :  { %v2688_v62 = vpop.eup %2687 }
0x10dd   :  { %v1583_v0 = vmul.f32 %v2688_v62, %v2680_v49  ;;  %v1709_v1 = vpop.xlane.xlu1 %1708  ;;  %v2690_v2 = vpop.eup %2689 }
0x10de   :  { %2691 = vrcp.f32 %v1709_v1  ;;  %v1712_v6 = vmul.f32 %v2690_v2, %v2678_v41 }
0x10df   :  { %2371 = vmatmul.msk.f32.vlgmr.msrb.gmra.mxu3 %vm301_vm3, %v1583_v0 }
0x10e4   :  { %v2692_v16 = vpop.eup %2691 }
0x10e5   :  { %v1713_v7 = vmul.f32 %v2692_v16, %v2682_v51 }
0x10f5   :  { %v2562_v4 = vpop.permute.xlu1 %2561 }
0x10f6   :  { %v2564_v5 = vunpack.i.h.bf16 %v2562_v4  ;;  %v2563_v13 = vunpack.i.l.bf16 %v2562_v4 }
0x10f8   :  { %1735 = vmatpush.msra.mxu2 %v2563_v13  ;;  %1761 = vmatpush.msra.mxu3 %v2564_v5 }
0x10f9   :  { %2376 = vmatmul.msk.f32.vlgmr.msra.gmra.mxu2 %vm301_vm3, %v1712_v6  ;;  %2377 = vmatmul.msk.f32.vlgmr.msra.gmra.mxu3 %vm301_vm3, %v1713_v7 }
0x113f   :  { %v1503_v8 = vpop.f32.mrf.mxu2 }
0x1140   :  { %v2565_v17 = vpack.i.bf16 %v1503_v8, %v3255_v21  ;;  %v2490_v21 = vld [vmem:[%s3417_s7 + $0x10] sm:$0xff] }
0x1141   :  { %1829 = vmatpush.bf16.msrb.mxu0 %v2490_v21 }
0x1142   :  { %2566 = vrot.lane.b32.xlu0 %v2565_v17, %s3463_s3 }
0x1147   :  { %v1607_v14 = vpop.f32.mrf.mxu2 }
0x1162   :  { %v1633_v15 = vpop.f32.mrf.mxu3 }
0x1163   :  { %v2570_v18 = vpack.i.bf16 %v1633_v15, %v1607_v14 }
0x1165   :  { %2571 = vrot.lane.b32.xlu0 %v2570_v18, %s3464_s14 }
0x117c   :  { %v1737_v20 = vpop.f32.mrf.mxu2  ;;  %v1763_v23 = vpop.f32.mrf.mxu3 }
0x117d   :  { %v2575_v22 = vpack.i.bf16 %v1763_v23, %v1737_v20 }
0x117f   :  { %2576 = vrot.lane.b32.xlu0 %v2575_v22, %s3465_s21  ;;  %s2207_s21 = sshll.u32 %s3429_s19, 4  ;;  %s2208_s21 = int_to_ptr.hbm [resolvable:$true] %s2207_s21 }
0x11b4   :  { %v2567_v24 = vpop.permute.xlu0 %2566 }
0x11b5   :  { %v2569_v27 = vunpack.i.h.bf16 %v2567_v24  ;;  %v2568_v28 = vunpack.i.l.bf16 %v2567_v24 }
0x11b7   :  { %v1791_v34 = vsel %vm301_vm3, %v3253_v19, %v2569_v27  ;;  %v1790_v35 = vsel %vm301_vm3, %v3245_v3, %v2568_v28  ;;  %v2591_v19 = vld [vmem:[%s3418_s8 + $0x1] ss:$0 sm:$0xff] }
0x11d7   :  { %v2572_v26 = vpop.permute.xlu0 %2571 }
0x11d8   :  { %v2574_v29 = vunpack.i.h.bf16 %v2572_v26  ;;  %v2573_v31 = vunpack.i.l.bf16 %v2572_v26 }
0x11da   :  { %v1793_v37 = vsel %vm843_vm0, %v1791_v34, %v2574_v29  ;;  %v1792_v39 = vsel %vm843_vm0, %v1790_v35, %v2573_v31 }
0x11f1   :  { %v2577_v32 = vpop.permute.xlu0 %2576 }
0x11f2   :  { %v2579_v36 = vunpack.i.h.bf16 %v2577_v32  ;;  %v2578_v33 = vunpack.i.l.bf16 %v2577_v32 }
0x11f4   :  { %v1795_v40 = vsel %vm846_vm5, %v1793_v37, %v2579_v36  ;;  %v1794_v47 = vsel %vm846_vm5, %v1792_v39, %v2578_v33 }
0x11f5   :  { %v1796_v41 = vpack.c.bf16 %v1795_v40, %v1794_v47 }
0x11f7   :  { %2391 = vmatmul.msk.bf16.vlgmr.msrb.gmra.mxu0 %vm166_vm4, %v1796_v41 }
0x1274   :  { %v1831_v38 = vpop.f32.mrf.mxu0 }
0x1275   :  { %v1832_v44 = vadd.f32 %v2591_v19, %v1831_v38 }
0x1277   :  { %v3300_v3 = vadd.f32 %v1832_v44, %v3144_v59  ;;  %v2592_v44 = vld [vmem:[%s3419_s9 + $0x1] ss:$0 sm:$0xff] }
0x1279   :  { %v1842_v45 = vsel %vm166_vm4, %v3300_v3, 0.0 }
0x127a   :  { %1843 = vadd.xlane.f32.xlu2 %v1842_v45 }
0x127c   :  { %v1833_v46 = vpop.f32.mrf.mxu0 }
0x127d   :  { %v1834_v42 = vadd.f32 %v2591_v19, %v1833_v46 }
0x127f   :  { %v3305_v48 = vadd.f32 %v1834_v42, %v3149_v63 }
0x1281   :  { %v1845_v49 = vsel %vm166_vm4, %v3305_v48, 0.0 }
0x1282   :  { %1846 = vadd.xlane.f32.xlu1 %v1845_v49 }
0x12ed   :  { %v1844_v43 = vpop.xlane.xlu2 %1843 }
0x12ee   :  { %v1848_v50 = vmul.f32 %v1844_v43, %v2908_v30 }
0x12f0   :  { %v3311_v51 = vsub.f32 %v3300_v3, %v1848_v50  ;;  %v2593_v50 = vld [vmem:[%s3420_s10 + $0x1] ss:$0 sm:$0xff] }
0x12f2   :  { %v1852_v59 = vmul.f32 %v3311_v51, %v3311_v51 }
0x12f4   :  { %v1854_v52 = vsel %vm166_vm4, %v1852_v59, 0.0 }
0x12f5   :  { %v1847_v9 = vpop.xlane.xlu1 %1846  ;;  %1855 = vadd.xlane.f32.xlu0 %v1854_v52 }
0x12f6   :  { %v1849_v63 = vmul.f32 %v1847_v9, %v2908_v30 }
0x12f8   :  { %v3318_v53 = vsub.f32 %v3305_v48, %v1849_v63  ;;  %v2501_v63 = vld [vmem:[%s3423_s13 + $0x78] sm:$0xff] }
0x12f9   :  { %2057 = vmatpush.bf16.msrb.mxu2 %v2501_v63 }
0x12fa   :  { %v1853_v54 = vmul.f32 %v3318_v53, %v3318_v53 }
0x12fc   :  { %v1857_v10 = vsel %vm166_vm4, %v1853_v54, 0.0  ;;  %v2499_v54 = vld [vmem:[%s3423_s13 + $0x68] sm:$0xff] }
0x12fd   :  { %1858 = vadd.xlane.f32.xlu2 %v1857_v10  ;;  %v2498_v10 = vld [vmem:[%s3423_s13 + $0x60] sm:$0xff] }
0x1368   :  { %v1856_v11 = vpop.xlane.xlu0 %1855 }
0x1369   :  { %v1860_v55 = vmul.f32 %v1856_v11, %v2908_v30  ;;  %v2497_v11 = vld [vmem:[%s3423_s13 + $0x58] sm:$0xff] }
0x136b   :  { %v1862_v57 = vadd.f32 1e-05, %v1860_v55  ;;  %v2496_v55 = vld [vmem:[%s3423_s13 + $0x50] sm:$0xff] }
0x136d   :  { %2693 = vrsqrt.f32 %v1862_v57  ;;  %vm1871_vm3 = vcmp.eq.f32.partialorder %v1862_v57, inf  ;;  %v1874_v8 = vand.u32 2147483648, %v1862_v57  ;;  %vm1873_vm0 = vcmp.eq.f32.partialorder %v1862_v57, 0.0 }
0x1370   :  { %v1859_v60 = vpop.xlane.xlu2 %1858 }
0x1371   :  { %v1861_v61 = vmul.f32 %v1859_v60, %v2908_v30 }
0x1373   :  { %v2694_v12 = vpop.eup %2693  ;;  %v1863_v62 = vadd.f32 1e-05, %v1861_v61 }
0x1374   :  { %v1865_v0 = vmul.f32 %v2694_v12, %v1862_v57 }
0x1375   :  { %2695 = vrsqrt.f32 %v1863_v62  ;;  %vm1883_vm5 = vcmp.eq.f32.partialorder %v1863_v62, inf  ;;  %v1886_v22 = vand.u32 2147483648, %v1863_v62  ;;  %vm1885_vm6 = vcmp.eq.f32.partialorder %v1863_v62, 0.0 }
0x1376   :  { %v1866_v1 = vmul.f32 %v2694_v12, %v1865_v0 }
0x1378   :  { %v1867_v2 = vmul.f32 0.5, %v1866_v1 }
0x137a   :  { %v1868_v16 = vsub.f32 1.5, %v1867_v2 }
0x137b   :  { %v2696_v4 = vpop.eup %2695 }
0x137c   :  { %v1869_v5 = vmul.f32 %v2694_v12, %v1868_v16  ;;  %v1877_v13 = vmul.f32 %v2696_v4, %v1863_v62 }
0x137e   :  { %v1870_v6 = vmul.f32 %v1869_v5, %v1862_v57  ;;  %v1878_v7 = vmul.f32 %v2696_v4, %v1877_v13 }
0x1380   :  { %v1872_v17 = vsel %vm1871_vm3, %v1862_v57, %v1870_v6  ;;  %v1879_v14 = vmul.f32 0.5, %v1878_v7  ;;  %v2494_v57 = vld [vmem:[%s3423_s13 + $0x40] sm:$0xff] }
0x1381   :  { %v1875_v15 = vsel %vm1873_vm0, %v1874_v8, %v1872_v17 }
0x1382   :  { %2697 = vrcp.f32 %v1875_v15  ;;  %v1880_v18 = vsub.f32 1.5, %v1879_v14  ;;  %v1899_v29 = vand.u32 2147483648, %v1875_v15  ;;  %vm1893_vm8 = vweird.f32 %v1875_v15 }
0x1383   :  { %v1897_v32 = vand.u32 2147483647, %v1875_v15 }
0x1384   :  { %v1881_v20 = vmul.f32 %v2696_v4, %v1880_v18  ;;  %v1900_v33 = vor.u32 1.1754944e-38, %v1899_v29 }
0x1385   :  { %vm1898_vm10 = vcmp.eq.f32.partialorder %v1897_v32, 8.507059e+37 }
0x1386   :  { %v1882_v23 = vmul.f32 %v1881_v20, %v1863_v62 }
0x1388   :  { %v2698_v25 = vpop.eup %2697  ;;  %v1884_v21 = vsel %vm1883_vm5, %v1863_v62, %v1882_v23 }
0x1389   :  { %v1887_v24 = vsel %vm1885_vm6, %v1886_v22, %v1884_v21  ;;  %v1889_v26 = vmul.f32 %v2698_v25, %v1875_v15  ;;  %vm1894_vm7 = vweird.f32 %v2698_v25 }
0x138a   :  { %2699 = vrcp.f32 %v1887_v24  ;;  %vm1895_vm9 = vmor %vm1893_vm8, %vm1894_vm7  ;;  %v1914_v40 = vand.u32 2147483648, %v1887_v24  ;;  %v1912_v41 = vand.u32 2147483647, %v1887_v24  ;;  %vm1908_vm12 = vweird.f32 %v1887_v24 }
0x138b   :  { %v1890_v27 = vsub.f32 1.0, %v1889_v26 }
0x138c   :  { %v1915_v45 = vor.u32 1.1754944e-38, %v1914_v40  ;;  %vm1913_vm14 = vcmp.eq.f32.partialorder %v1912_v41, 8.507059e+37 }
0x138d   :  { %v1891_v28 = vmul.f32 %v2698_v25, %v1890_v27 }
0x138f   :  { %v1892_v31 = vadd.f32 %v2698_v25, %v1891_v28 }
0x1390   :  { %v2700_v34 = vpop.eup %2699 }
0x1391   :  { %v1896_v35 = vsel %vm1895_vm9, %v2698_v25, %v1892_v31  ;;  %v1904_v36 = vmul.f32 %v2700_v34, %v1887_v24  ;;  %vm1909_vm11 = vweird.f32 %v2700_v34  ;;  %v2595_v24 = vld [vmem:[%s3456_s0 + $0x1] ss:$0 sm:$0xff] }
0x1392   :  { %v1901_v39 = vsel %vm1898_vm10, %v1900_v33, %v1896_v35  ;;  %vm1910_vm13 = vmor %vm1908_vm12, %vm1909_vm11 }
0x1393   :  { %v1905_v37 = vsub.f32 1.0, %v1904_v36  ;;  %v1902_v19 = vmul.f32 %v1901_v39, %v3311_v51 }
0x1395   :  { %v1906_v47 = vmul.f32 %v2700_v34, %v1905_v37  ;;  %v1921_v43 = vmul.f32 %v2592_v44, %v1902_v19 }
0x1397   :  { %v1907_v38 = vadd.f32 %v2700_v34, %v1906_v47  ;;  %v1926_v51 = vadd.f32 %v2593_v50, %v1921_v43 }
0x1399   :  { %v1911_v46 = vsel %vm1910_vm13, %v2700_v34, %v1907_v38 }
0x139a   :  { %v1916_v42 = vsel %vm1913_vm14, %v1915_v45, %v1911_v46  ;;  %v2503_v45 = vld [vmem:[%s3427_s17 + $0x8] sm:$0xff] }
0x139b   :  { %v1917_v49 = vmul.f32 %v1916_v42, %v3318_v53  ;;  %v2500_v53 = vld [vmem:[%s3423_s13 + $0x70] sm:$0xff]  ;;  %2191 = vmatpush.bf16.msrb.mxu3 %v2503_v45  ;;  %v2502_v42 = vld [vmem:[%s3427_s17] sm:$0xff] }
0x139c   :  { %2058 = vmatpush.bf16.msrb.mxu2 %v2500_v53 }
0x139d   :  { %v1922_v59 = vmul.f32 %v2592_v44, %v1917_v49 }
0x139f   :  { %v1927_v52 = vadd.f32 %v2593_v50, %v1922_v59  ;;  %2192 = vmatpush.bf16.msrb.mxu3 %v2502_v42 }
0x13a0   :  { %2059 = vmatpush.bf16.msrb.mxu2 %v2499_v54 }
0x13a1   :  { %v1928_v9 = vpack.c.bf16 %v1927_v52, %v1926_v51 }
0x13a3   :  { %2407 = vmatmul.msk.bf16.vlgmr.msrb.gmra.mxu1 %vm166_vm4, %v1928_v9 }
0x13a4   :  { %2060 = vmatpush.bf16.msrb.mxu2 %v2498_v10 }
0x13a8   :  { %2061 = vmatpush.bf16.msrb.mxu2 %v2497_v11 }
0x13ac   :  { %2062 = vmatpush.bf16.msrb.mxu2 %v2496_v55 }
0x13b0   :  { %2063 = vmatpush.bf16.msrb.mxu2 %v2495_v56 }
0x13b4   :  { %2064 = vmatpush.bf16.msrb.mxu2 %v2494_v57 }
0x1420   :  { %v1963_v60 = vpop.f32.mrf.mxu1 }
0x1421   :  { %v1964_v61 = vadd.f32 %v2594_v58, %v1963_v60 }
0x1423   :  { %v1970_v12 = vmul.f32 0.044715, %v1964_v61  ;;  %v1968_v18 = vmul.f32 0.5, %v1964_v61 }
0x1425   :  { %v1972_v62 = vmul.f32 %v1970_v12, %v1964_v61 }
0x1427   :  { %v1974_v0 = vmul.f32 %v1972_v62, %v1964_v61 }
0x1428   :  { %v1965_v1 = vpop.f32.mrf.mxu1 }
0x1429   :  { %v1976_v2 = vadd.f32 %v1974_v0, %v1964_v61  ;;  %v1966_v16 = vadd.f32 %v2594_v58, %v1965_v1 }
0x142b   :  { %v1971_v4 = vmul.f32 0.044715, %v1966_v16  ;;  %v1978_v5 = vmul.f32 0.7978846, %v1976_v2  ;;  %v1969_v20 = vmul.f32 0.5, %v1966_v16 }
0x142d   :  { %v1973_v13 = vmul.f32 %v1971_v4, %v1966_v16  ;;  %2701 = vtanh.f32 %v1978_v5 }
0x142f   :  { %v1975_v6 = vmul.f32 %v1973_v13, %v1966_v16 }
0x1431   :  { %v1977_v7 = vadd.f32 %v1975_v6, %v1966_v16 }
0x1433   :  { %v1979_v8 = vmul.f32 0.7978846, %v1977_v7  ;;  %v2702_v17 = vpop.eup %2701 }
0x1434   :  { %v1982_v14 = vadd.f32 1.0, %v2702_v17 }
0x1435   :  { %2703 = vtanh.f32 %v1979_v8 }
0x1436   :  { %v1984_v22 = vmul.f32 %v1982_v14, %v1968_v18 }
0x143b   :  { %v2704_v15 = vpop.eup %2703 }
0x143c   :  { %v1983_v23 = vadd.f32 1.0, %v2704_v15 }
0x143e   :  { %v1985_v25 = vmul.f32 %v1983_v23, %v1969_v20 }
0x1440   :  { %v1986_v21 = vpack.c.bf16 %v1985_v25, %v1984_v22 }
0x1442   :  { %2065 = vmatmul.bf16.vlgmr.msrb.gmra.mxu2 %v1986_v21 }
0x14c5   :  { %v2066_v26 = vpop.f32.mrf.mxu2 }
0x14c6   :  { %v2067_v27 = vadd.f32 %v2595_v24, %v2066_v26  ;;  %v2596_v26 = vld [vmem:[%s3425_s15] ss:$0 sm:$0xff] }
0x14c8   :  { %v2071_v28 = vadd.f32 %v2067_v27, %v3300_v3 }
0x14ca   :  { %v2075_v29 = vsel %vm166_vm4, %v2071_v28, 0.0 }
0x14cb   :  { %2076 = vadd.xlane.f32.xlu1 %v2075_v29 }
0x14cd   :  { %v2068_v31 = vpop.f32.mrf.mxu2 }
0x14ce   :  { %v2069_v32 = vadd.f32 %v2595_v24, %v2068_v31 }
0x14d0   :  { %v2072_v34 = vadd.f32 %v2069_v32, %v3305_v48 }
0x14d2   :  { %v2078_v35 = vsel %vm166_vm4, %v2072_v34, 0.0 }
0x14d3   :  { %2079 = vadd.xlane.f32.xlu0 %v2078_v35 }
0x153e   :  { %v2077_v36 = vpop.xlane.xlu1 %2076 }
0x153f   :  { %v2081_v33 = vmul.f32 %v2077_v36, %v2908_v30 }
0x1541   :  { %v3375_v37 = vsub.f32 %v2071_v28, %v2081_v33 }
0x1543   :  { %v2085_v39 = vmul.f32 %v3375_v37, %v3375_v37 }
0x1545   :  { %v2087_v3 = vsel %vm166_vm4, %v2085_v39, 0.0  ;;  %v2598_v39 = vld [vmem:[%s3428_s18] ss:$0 sm:$0xff] }
0x1546   :  { %v2080_v40 = vpop.xlane.xlu0 %2079  ;;  %2088 = vadd.xlane.f32.xlu2 %v2087_v3 }
0x1547   :  { %v2082_v47 = vmul.f32 %v2080_v40, %v2908_v30 }
0x1549   :  { %v3381_v41 = vsub.f32 %v2072_v34, %v2082_v47  ;;  %v2597_v34 = vld [vmem:[%s3426_s16] ss:$0 sm:$0xff]  ;;  %s2758_s16 = smov 128  }
0x154b   :  { %v2086_v48 = vmul.f32 %v3381_v41, %v3381_v41 }
0x154d   :  { %v2090_v19 = vsel %vm166_vm4, %v2086_v48, 0.0 }
0x154e   :  { %2091 = vadd.xlane.f32.xlu1 %v2090_v19 }
0x15b9   :  { %v2089_v38 = vpop.xlane.xlu2 %2088 }
0x15ba   :  { %v2093_v44 = vmul.f32 %v2089_v38, %v2908_v30 }
0x15bc   :  { %v2095_v46 = vadd.f32 1e-05, %v2093_v44 }
0x15be   :  { %2705 = vrsqrt.f32 %v2095_v46  ;;  %vm2104_vm15 = vcmp.eq.f32.partialorder %v2095_v46, inf  ;;  %v2107_v56 = vand.u32 2147483648, %v2095_v46  ;;  %vm2106_vm1 = vcmp.eq.f32.partialorder %v2095_v46, 0.0 }
0x15c1   :  { %v2092_v49 = vpop.xlane.xlu1 %2091 }
0x15c2   :  { %v2094_v43 = vmul.f32 %v2092_v49, %v2908_v30 }
0x15c4   :  { %v2706_v50 = vpop.eup %2705  ;;  %v2096_v59 = vadd.f32 1e-05, %v2094_v43 }
0x15c5   :  { %v2098_v51 = vmul.f32 %v2706_v50, %v2095_v46 }
0x15c6   :  { %2707 = vrsqrt.f32 %v2096_v59  ;;  %vm2116_vm2 = vcmp.eq.f32.partialorder %v2096_v59, inf  ;;  %v2119_v62 = vand.u32 2147483648, %v2096_v59  ;;  %vm2118_vm3 = vcmp.eq.f32.partialorder %v2096_v59, 0.0 }
0x15c7   :  { %v2099_v52 = vmul.f32 %v2706_v50, %v2098_v51 }
0x15c9   :  { %v2100_v9 = vmul.f32 0.5, %v2099_v52 }
0x15cb   :  { %v2101_v63 = vsub.f32 1.5, %v2100_v9 }
0x15cc   :  { %v2708_v53 = vpop.eup %2707 }
0x15cd   :  { %v2102_v54 = vmul.f32 %v2706_v50, %v2101_v63  ;;  %v2110_v10 = vmul.f32 %v2708_v53, %v2096_v59 }
0x15cf   :  { %v2103_v11 = vmul.f32 %v2102_v54, %v2095_v46  ;;  %v2111_v55 = vmul.f32 %v2708_v53, %v2110_v10 }
0x15d1   :  { %v2105_v57 = vsel %vm2104_vm15, %v2095_v46, %v2103_v11  ;;  %v2112_v58 = vmul.f32 0.5, %v2111_v55 }
0x15d2   :  { %v2108_v60 = vsel %vm2106_vm1, %v2107_v56, %v2105_v57 }
0x15d3   :  { %2709 = vrcp.f32 %v2108_v60  ;;  %v2113_v30 = vsub.f32 1.5, %v2112_v58  ;;  %v2132_v13 = vand.u32 2147483648, %v2108_v60  ;;  %vm2126_vm5 = vweird.f32 %v2108_v60 }
0x15d4   :  { %v2130_v7 = vand.u32 2147483647, %v2108_v60 }
0x15d5   :  { %v2114_v61 = vmul.f32 %v2708_v53, %v2113_v30  ;;  %v2133_v15 = vor.u32 1.1754944e-38, %v2132_v13 }
0x15d6   :  { %vm2131_vm7 = vcmp.eq.f32.partialorder %v2130_v7, 8.507059e+37 }
0x15d7   :  { %v2115_v12 = vmul.f32 %v2114_v61, %v2096_v59 }
0x15d9   :  { %v2710_v0 = vpop.eup %2709  ;;  %v2117_v1 = vsel %vm2116_vm2, %v2096_v59, %v2115_v12 }
0x15da   :  { %v2120_v2 = vsel %vm2118_vm3, %v2119_v62, %v2117_v1  ;;  %v2122_v16 = vmul.f32 %v2710_v0, %v2108_v60  ;;  %vm2127_vm0 = vweird.f32 %v2710_v0 }
0x15db   :  { %2711 = vrcp.f32 %v2120_v2  ;;  %vm2128_vm6 = vmor %vm2126_vm5, %vm2127_vm0  ;;  %v2147_v23 = vand.u32 2147483648, %v2120_v2  ;;  %v2145_v25 = vand.u32 2147483647, %v2120_v2  ;;  %vm2141_vm9 = vweird.f32 %v2120_v2 }
0x15dc   :  { %v2123_v4 = vsub.f32 1.0, %v2122_v16 }
0x15dd   :  { %v2148_v27 = vor.u32 1.1754944e-38, %v2147_v23  ;;  %vm2146_vm11 = vcmp.eq.f32.partialorder %v2145_v25, 8.507059e+37 }
0x15de   :  { %v2124_v5 = vmul.f32 %v2710_v0, %v2123_v4 }
0x15e0   :  { %v2125_v6 = vadd.f32 %v2710_v0, %v2124_v5 }
0x15e1   :  { %v2712_v8 = vpop.eup %2711 }
0x15e2   :  { %v2129_v17 = vsel %vm2128_vm6, %v2710_v0, %v2125_v6  ;;  %v2137_v14 = vmul.f32 %v2712_v8, %v2120_v2  ;;  %vm2142_vm8 = vweird.f32 %v2712_v8 }
0x15e3   :  { %v2134_v20 = vsel %vm2131_vm7, %v2133_v15, %v2129_v17  ;;  %vm2143_vm10 = vmor %vm2141_vm9, %vm2142_vm8 }
0x15e4   :  { %v2138_v18 = vsub.f32 1.0, %v2137_v14  ;;  %v2135_v21 = vmul.f32 %v2134_v20, %v3375_v37 }
0x15e6   :  { %v2139_v22 = vmul.f32 %v2712_v8, %v2138_v18  ;;  %v2154_v32 = vmul.f32 %v2596_v26, %v2135_v21 }
0x15e8   :  { %v2140_v24 = vadd.f32 %v2712_v8, %v2139_v22  ;;  %v2159_v36 = vadd.f32 %v2597_v34, %v2154_v32 }
0x15ea   :  { %v2144_v28 = vsel %vm2143_vm10, %v2712_v8, %v2140_v24 }
0x15eb   :  { %v2149_v29 = vsel %vm2146_vm11, %v2148_v27, %v2144_v28 }
0x15ec   :  { %v2150_v31 = vmul.f32 %v2149_v29, %v3381_v41 }
0x15ee   :  { %v2155_v35 = vmul.f32 %v2596_v26, %v2150_v31 }
0x15f0   :  { %v2160_v33 = vadd.f32 %v2597_v34, %v2155_v35 }
0x15f2   :  { %v2161_v37 = vpack.c.bf16 %v2160_v33, %v2159_v36 }
0x15f4   :  { %2465 = vmatmul.msk.bf16.vlgmr.msrb.gmra.mxu3 %vm166_vm4, %v2161_v37 }
0x1677   :  { %v2194_v3 = vpop.f32.mrf.mxu3 }
0x1678   :  { %v2195_v40 = vadd.f32 %v2598_v39, %v2194_v3 }
0x167a   :  { %2199 = vst [vmem:[#allocation2] sm:$0xff] %v2195_v40 }
0x167f   :  { %v2196_v47 = vpop.f32.mrf.mxu3 }
0x1680   :  { %v2197_v41 = vadd.f32 %v2598_v39, %v2196_v47 }
0x1682   :  { %2200 = vst [vmem:[#allocation2 + $0x8] sm:$0xff] %v2197_v41 }
0x1683   :  { %2213 = dma.vmem_to_hbm [thread:$0]  %s2206_s23, 256, %s2208_s21, [#allocation3], %s2758_s16, %s2758_s16, %s3463_s3  }
0x1684   :  { %2737 = dma.done.wait [#allocation3], 256  }
0x1685   :  { %2738 = vsyncadd [#allocation3], 4294967040 }
0x1686   :  { %2218 = vsyncpa [#allocation3], 1 }

</bundles_post_ra>
